<compile_context>
chip_gen: v5e
topology: v5e:2x2
jax: 0.10.0
libtpu: 0.0.40
codegen_flags: <defaults>
</compile_context>

<pallas_src>
import functools
import math

import jax
import jax.numpy as jnp
from jax.experimental import pallas as pl
from jax.experimental.pallas import tpu as pltpu

EPS = 1e-5                       # nn.LayerNorm default eps
VMEM_LIMIT = 64 * 1024 * 1024    # explicit scoped-VMEM limit


def _cparams(*sem):
    return pltpu.CompilerParams(dimension_semantics=sem,
                                vmem_limit_bytes=VMEM_LIMIT)


def _layernorm(x, g, b):
    x = x.astype(jnp.float32)
    mean = jnp.mean(x, axis=-1, keepdims=True)
    var = jnp.mean((x - mean) ** 2, axis=-1, keepdims=True)
    return (x - mean) * jax.lax.rsqrt(var + EPS) * g + b


def _gelu_exact(x):
    # PyTorch nn.GELU() default (erf-based, exact)
    return 0.5 * x * (1.0 + jax.lax.erf(x / jnp.sqrt(2.0).astype(x.dtype)))


def _pick_tile(dim, target, quantum):
    """Largest divisor of `dim` that is a multiple of `quantum` and <= target
    (falls back to the full dim, which is always a legal block extent)."""
    if dim <= target:
        return dim
    t = max((target // quantum) * quantum, quantum)
    while t >= quantum:
        if dim % t == 0:
            return t
        t -= quantum
    return dim


# ----------------------------------------------------------------------------
# 1) Fused QKV projection:  qkv = x @ [Wq | Wk | Wv] + [bq | bk | bv]
# ----------------------------------------------------------------------------
def qkv_kernel(x_ref, w_ref, b_ref, o_ref):
    x = x_ref[...].astype(jnp.bfloat16)
    y = jnp.dot(x, w_ref[...], preferred_element_type=jnp.float32) + b_ref[0]
    o_ref[...] = y.astype(o_ref.dtype)


def qkv_proj(x2d, wqkv, bqkv, *, row_tile):
    N, D = x2d.shape
    E3 = wqkv.shape[1]
    tr = _pick_tile(N, row_tile, 16)
    return pl.pallas_call(
        qkv_kernel,
        out_shape=jax.ShapeDtypeStruct((N, E3), jnp.bfloat16),
        grid=(N // tr,),
        in_specs=[pl.BlockSpec((tr, D), lambda r: (r, 0)),
                  pl.BlockSpec((D, E3), lambda r: (0, 0)),
                  pl.BlockSpec((1, E3), lambda r: (0, 0))],
        out_specs=pl.BlockSpec((tr, E3), lambda r: (r, 0)),
        compiler_params=_cparams("parallel"),
    )(x2d, wqkv, bqkv)


# ----------------------------------------------------------------------------
# 2) Attention core: batched over heads, grid = (batch, query-row tiles)
# ----------------------------------------------------------------------------
def attention_kernel(inv_scale, q_ref, k_ref, v_ref, o_ref):
    q = q_ref[0]                      # [H, TQ, hd]  bf16
    k = k_ref[0]                      # [H, S,  hd]  bf16
    v = v_ref[0]                      # [H, S,  hd]  bf16
    s = jnp.einsum('hqd,hkd->hqk', q, k,
                   preferred_element_type=jnp.float32) * inv_scale
    m = jnp.max(s, axis=-1, keepdims=True)
    e = jnp.exp(s - m)
    denom = jnp.sum(e, axis=-1, keepdims=True)
    p = e * pl.reciprocal(denom, approx=True)
    ctx = jnp.einsum('hqk,hkd->hqd', p.astype(jnp.bfloat16), v,
                     preferred_element_type=jnp.float32)
    o_ref[0] = ctx.astype(o_ref.dtype)


def attention(q, k, v, *, q_tile):
    # q, k, v: [B, H, S, hd] bf16
    B, H, S, hd = q.shape
    tq = _pick_tile(S, q_tile, 16)
    inv_scale = 1.0 / math.sqrt(hd)
    kernel = functools.partial(attention_kernel, inv_scale)
    # TODO(synk): for long sequences, tile K/V with an online-softmax
    # (flash-style) reduction axis instead of holding full [H,S,hd] K/V blocks.
    return pl.pallas_call(
        kernel,
        out_shape=jax.ShapeDtypeStruct((B, H, S, hd), jnp.bfloat16),
        grid=(B, S // tq),
        in_specs=[pl.BlockSpec((1, H, tq, hd), lambda b, i: (b, 0, i, 0)),
                  pl.BlockSpec((1, H, S, hd), lambda b, i: (b, 0, 0, 0)),
                  pl.BlockSpec((1, H, S, hd), lambda b, i: (b, 0, 0, 0))],
        out_specs=pl.BlockSpec((1, H, tq, hd), lambda b, i: (b, 0, i, 0)),
        compiler_params=_cparams("parallel", "parallel"),
    )(q, k, v)


# ----------------------------------------------------------------------------
# 3) Block tail: out-proj + residual + LN1 + MLP (M-tiled) + residual + LN2
#    grid = (row tiles [parallel], mlp-hidden tiles [arbitrary])
# ----------------------------------------------------------------------------
def block_tail_kernel(x_ref, ctx_ref, wo_ref, bo_ref, g1_ref, be1_ref,
                      w1_ref, b1_ref, w2_ref, b2_ref, g2_ref, be2_ref,
                      o_ref, h1_scr, acc_scr):
    m_idx = pl.program_id(1)
    n_m = pl.num_programs(1)

    @pl.when(m_idx == 0)
    def _():
        # Single full-width out-projection: ctx[rows, D] @ Wo[D, D]
        attn = (jnp.dot(ctx_ref[...], wo_ref[...],
                        preferred_element_type=jnp.float32) + bo_ref[0])
        h1_scr[...] = _layernorm(x_ref[...] + attn, g1_ref[0], be1_ref[0])
        acc_scr[...] = jnp.zeros_like(acc_scr)

    h1b = h1_scr[...].astype(jnp.bfloat16)
    t = _gelu_exact(jnp.dot(h1b, w1_ref[...],
                            preferred_element_type=jnp.float32) + b1_ref[0])
    acc_scr[...] += jnp.dot(t.astype(jnp.bfloat16), w2_ref[...],
                            preferred_element_type=jnp.float32)

    @pl.when(m_idx == n_m - 1)
    def _():
        h2 = _layernorm(h1_scr[...] + acc_scr[...] + b2_ref[0],
                        g2_ref[0], be2_ref[0])
        o_ref[...] = h2.astype(o_ref.dtype)


def block_tail(x2d, ctx2d, blk, *, row_tile, m_tile):
    N, D = x2d.shape
    M = blk['w1'].shape[1]
    tr = _pick_tile(N, row_tile, 16)
    tm = _pick_tile(M, m_tile, 128)
    return pl.pallas_call(
        block_tail_kernel,
        out_shape=jax.ShapeDtypeStruct((N, D), jnp.float32),
        grid=(N // tr, M // tm),
        in_specs=[pl.BlockSpec((tr, D), lambda r, m: (r, 0)),    # x (residual)
                  pl.BlockSpec((tr, D), lambda r, m: (r, 0)),    # ctx
                  pl.BlockSpec((D, D), lambda r, m: (0, 0)),     # wo
                  pl.BlockSpec((1, D), lambda r, m: (0, 0)),     # bo
                  pl.BlockSpec((1, D), lambda r, m: (0, 0)),     # ln1 gamma
                  pl.BlockSpec((1, D), lambda r, m: (0, 0)),     # ln1 beta
                  pl.BlockSpec((D, tm), lambda r, m: (0, m)),    # w1 block
                  pl.BlockSpec((1, tm), lambda r, m: (0, m)),    # b1 block
                  pl.BlockSpec((tm, D), lambda r, m: (m, 0)),    # w2 block
                  pl.BlockSpec((1, D), lambda r, m: (0, 0)),     # b2
                  pl.BlockSpec((1, D), lambda r, m: (0, 0)),     # ln2 gamma
                  pl.BlockSpec((1, D), lambda r, m: (0, 0))],    # ln2 beta
        out_specs=pl.BlockSpec((tr, D), lambda r, m: (r, 0)),
        scratch_shapes=[pltpu.VMEM((tr, D), jnp.float32),        # h1
                        pltpu.VMEM((tr, D), jnp.float32)],       # mlp acc
        compiler_params=_cparams("parallel", "arbitrary"),
    )(x2d, ctx2d, blk['wo'], blk['bo'], blk['ln1g'], blk['ln1b'],
      blk['w1'], blk['b1'], blk['w2'], blk['b2'], blk['ln2g'], blk['ln2b'])


# ----------------------------------------------------------------------------
# 4) Final LayerNorm + LM head, tiled over (row tiles, vocab tiles)
# ----------------------------------------------------------------------------
def head_kernel(x_ref, g_ref, b_ref, w_ref, bh_ref, o_ref):
    xn = _layernorm(x_ref[...], g_ref[0], b_ref[0]).astype(jnp.bfloat16)
    o_ref[...] = (jnp.dot(xn, w_ref[...], preferred_element_type=jnp.float32)
                  + bh_ref[0]).astype(o_ref.dtype)


def final_norm_head(x2d, lnf_g, lnf_b, w_head, b_head, *, row_tile, v_tile):
    N, D = x2d.shape
    V = w_head.shape[1]
    tn = _pick_tile(N, row_tile, 16)
    tv = _pick_tile(V, v_tile, 128)
    return pl.pallas_call(
        head_kernel,
        out_shape=jax.ShapeDtypeStruct((N, V), jnp.float32),
        grid=(N // tn, V // tv),
        in_specs=[pl.BlockSpec((tn, D), lambda n, v: (n, 0)),
                  pl.BlockSpec((1, D), lambda n, v: (0, 0)),
                  pl.BlockSpec((1, D), lambda n, v: (0, 0)),
                  pl.BlockSpec((D, tv), lambda n, v: (0, v)),
                  pl.BlockSpec((1, tv), lambda n, v: (0, v))],
        out_specs=pl.BlockSpec((tn, tv), lambda n, v: (n, v)),
        compiler_params=_cparams("parallel", "parallel"),
    )(x2d, lnf_g, lnf_b, w_head, b_head)


# ----------------------------------------------------------------------------
# Full GPT forward (Pallas kernels for all hot-path compute).
# ----------------------------------------------------------------------------
def gpt_forward(input_ids, dparams, num_heads, *,
                row_tile=256, q_tile=256, m_tile=512, v_tile=1024):
    B, S = input_ids.shape
    x = dparams['tok_emb'][input_ids] + dparams['pos_emb'][:S][None, :, :]
    D = x.shape[-1]
    hd = D // num_heads
    x2d = x.reshape(B * S, D).astype(jnp.float32)
    # dropout p = 0.0 -> identity

    for blk in dparams['blocks']:
        qkv = qkv_proj(x2d, blk['wqkv'], blk['bqkv'], row_tile=row_tile)
        # Head split is plain-JAX layout plumbing between kernels.
        qkv = qkv.reshape(B, S, 3, num_heads, hd)
        q = qkv[:, :, 0].transpose(0, 2, 1, 3)       # [B, H, S, hd]
        k = qkv[:, :, 1].transpose(0, 2, 1, 3)
        v = qkv[:, :, 2].transpose(0, 2, 1, 3)
        ctx = attention(q, k, v, q_tile=q_tile)      # [B, H, S, hd] bf16
        ctx2d = ctx.transpose(0, 2, 1, 3).reshape(B * S, D)
        x2d = block_tail(x2d, ctx2d, blk, row_tile=row_tile, m_tile=m_tile)

    logits = final_norm_head(x2d, dparams['lnf_g'], dparams['lnf_b'],
                             dparams['w_head'], dparams['b_head'],
                             row_tile=row_tile, v_tile=v_tile)
    return logits.reshape(B, S, -1)


# ----------------------------------------------------------------------------
# Pure-JAX reference mirroring the kernel precision policy
# (bf16 matmul operands, f32 accumulation / elementwise).
# ----------------------------------------------------------------------------
def gpt_reference(input_ids, params, num_heads):
    f32, bf16 = jnp.float32, jnp.bfloat16
    B, S = input_ids.shape
    x = params['tok_emb'][input_ids] + params['pos_emb'][:S][None, :, :]
    for blk in params['blocks']:
        D = x.shape[-1]
        hd = D // num_heads
        wqkv = jnp.concatenate([blk['wq'], blk['wk'], blk['wv']], axis=1)
        bqkv = jnp.concatenate([blk['bq'], blk['bk'], blk['bv']], axis=1)
        qkv = (jnp.einsum('bsd,de->bse', x.astype(bf16), wqkv.astype(bf16),
                          preferred_element_type=f32) + bqkv[0]).astype(bf16)
        qkv = qkv.reshape(B, S, 3, num_heads, hd)
        q = qkv[:, :, 0].transpose(0, 2, 1, 3)
        k = qkv[:, :, 1].transpose(0, 2, 1, 3)
        v = qkv[:, :, 2].transpose(0, 2, 1, 3)
        s = jnp.einsum('bhqd,bhkd->bhqk', q, k,
                       preferred_element_type=f32) / math.sqrt(hd)
        p = jax.nn.softmax(s, axis=-1)
        ctx = jnp.einsum('bhqk,bhkd->bhqd', p.astype(bf16), v,
                         preferred_element_type=f32).astype(bf16)
        ctx = ctx.transpose(0, 2, 1, 3).reshape(B, S, D)
        attn = jnp.einsum('bsd,de->bse', ctx, blk['wo'].astype(bf16),
                          preferred_element_type=f32) + blk['bo'][0]
        h1 = _layernorm(x + attn, blk['ln1g'][0], blk['ln1b'][0])
        t = _gelu_exact(jnp.einsum('bsd,dm->bsm', h1.astype(bf16),
                                   blk['w1'].astype(bf16),
                                   preferred_element_type=f32) + blk['b1'][0])
        mlp = jnp.einsum('bsm,md->bsd', t.astype(bf16), blk['w2'].astype(bf16),
                         preferred_element_type=f32) + blk['b2'][0]
        x = _layernorm(h1 + mlp, blk['ln2g'][0], blk['ln2b'][0])
    xn = _layernorm(x, params['lnf_g'][0], params['lnf_b'][0]).astype(bf16)
    return jnp.einsum('bsd,dv->bsv', xn, params['w_head'].astype(bf16),
                      preferred_element_type=f32) + params['b_head'][0]


# ----------------------------------------------------------------------------
# Deterministic parameter initialization (mimics PyTorch default inits).
# ----------------------------------------------------------------------------
def init_params(key, vocab_size, max_seq_len, embed_dim, mlp_dim, num_layers):
    keys = iter(jax.random.split(key, 128))

    def linear(fin, fout):
        bound = 1.0 / math.sqrt(fin)
        w = jax.random.uniform(next(keys), (fin, fout), jnp.float32, -bound, bound)
        b = jax.random.uniform(next(keys), (1, fout), jnp.float32, -bound, bound)
        return w, b

    params = {
        'tok_emb': jax.random.normal(next(keys), (vocab_size, embed_dim), jnp.float32),
        'pos_emb': jax.random.normal(next(keys), (max_seq_len, embed_dim), jnp.float32),
        'lnf_g': jnp.ones((1, embed_dim), jnp.float32),
        'lnf_b': jnp.zeros((1, embed_dim), jnp.float32),
    }
    params['w_head'], params['b_head'] = linear(embed_dim, vocab_size)

    blocks = []
    for _ in range(num_layers):
        blk = {}
        blk['wq'], blk['bq'] = linear(embed_dim, embed_dim)
        blk['wk'], blk['bk'] = linear(embed_dim, embed_dim)
        blk['wv'], blk['bv'] = linear(embed_dim, embed_dim)
        blk['wo'], blk['bo'] = linear(embed_dim, embed_dim)
        blk['ln1g'] = jnp.ones((1, embed_dim), jnp.float32)
        blk['ln1b'] = jnp.zeros((1, embed_dim), jnp.float32)
        blk['w1'], blk['b1'] = linear(embed_dim, mlp_dim)
        blk['w2'], blk['b2'] = linear(mlp_dim, embed_dim)
        blk['ln2g'] = jnp.ones((1, embed_dim), jnp.float32)
        blk['ln2b'] = jnp.zeros((1, embed_dim), jnp.float32)
        blocks.append(blk)
    params['blocks'] = blocks
    return params


def prepare_device_params(params):
    """Pack / cast parameters for the Pallas path: fuse the q/k/v projection
    and store matmul weights in bf16 (biases, LN params, embeddings stay f32)."""
    bf16 = jnp.bfloat16
    dp = {
        'tok_emb': params['tok_emb'],
        'pos_emb': params['pos_emb'],
        'lnf_g': params['lnf_g'], 'lnf_b': params['lnf_b'],
        'w_head': params['w_head'].astype(bf16),
        'b_head': params['b_head'],
        'blocks': [],
    }
    for blk in params['blocks']:
        dp['blocks'].append({
            'wqkv': jnp.concatenate([blk['wq'], blk['wk'], blk['wv']],
                                    axis=1).astype(bf16),
            'bqkv': jnp.concatenate([blk['bq'], blk['bk'], blk['bv']], axis=1),
            'wo': blk['wo'].astype(bf16), 'bo': blk['bo'],
            'ln1g': blk['ln1g'], 'ln1b': blk['ln1b'],
            'w1': blk['w1'].astype(bf16), 'b1': blk['b1'],
            'w2': blk['w2'].astype(bf16), 'b2': blk['b2'],
            'ln2g': blk['ln2g'], 'ln2b': blk['ln2b'],
        })
    return dp


if __name__ == "__main__":
    # Small config consistent with the module's forward.  Tile targets are
    # chosen so every grid axis has >1 step (exercises all index maps).
    VOCAB, MAX_SEQ, EMBED, MLP, HEADS, LAYERS = 256, 64, 64, 256, 4, 2
    B, S = 2, 32

    key = jax.random.PRNGKey(0)
    k_param, k_ids = jax.random.split(key)
    params = init_params(k_param, VOCAB, MAX_SEQ, EMBED, MLP, LAYERS)
    dparams = prepare_device_params(params)
    input_ids = jax.random.randint(k_ids, (B, S), 0, VOCAB, dtype=jnp.int32)

    fwd = jax.jit(functools.partial(gpt_forward, num_heads=HEADS,
                                    row_tile=16, q_tile=16,
                                    m_tile=128, v_tile=128))
    logits = jax.block_until_ready(fwd(input_ids, dparams))

    ref = jax.block_until_ready(gpt_reference(input_ids, params, HEADS))

    assert logits.shape == (B, S, VOCAB), logits.shape
    assert bool(jnp.all(jnp.isfinite(logits)))
    max_err = float(jnp.max(jnp.abs(logits - ref)))
    # bf16 MXU operands + approx softmax reciprocal -> modest tolerance.
    assert jnp.allclose(logits, ref, rtol=2e-2, atol=2e-2), max_err
    print("KERNEL_OK")
</pallas_src>

<mosaic_0001>
module attributes {stable_mosaic.version = 11 : i64} {
  func.func @qkv_kernel(%arg0: i32, %arg1: memref<16x64xf32, #tpu.memory_space<vmem>>, %arg2: memref<64x192xbf16, #tpu.memory_space<vmem>>, %arg3: memref<1x192xf32, #tpu.memory_space<vmem>>, %arg4: memref<16x192xbf16, #tpu.memory_space<vmem>>) attributes {dimension_semantics = [#tpu.dimension_semantics<parallel>], iteration_bounds = array<i64: 4>, scalar_prefetch = 0 : i64, scratch_operands = 0 : i64, tpu.core_type = #tpu.core_type<tc>, window_params = [{transform_indices = @transform_0, window_bounds = array<i64: 16, 64>}, {pipeline_mode = #tpu.pipeline_mode<synchronous>, transform_indices = @transform_1, window_bounds = array<i64: 64, 192>}, {pipeline_mode = #tpu.pipeline_mode<synchronous>, transform_indices = @transform_2, window_bounds = array<i64: 1, 192>}, {transform_indices = @transform_3, window_bounds = array<i64: 16, 192>}]} {
    %c0 = arith.constant 0 : index
    %c0_0 = arith.constant 0 : index
    %0 = vector.load %arg1[%c0, %c0_0] : memref<16x64xf32, #tpu.memory_space<vmem>>, vector<16x64xf32>
    %1 = arith.truncf %0 : vector<16x64xf32> to vector<16x64xbf16>
    %c0_1 = arith.constant 0 : index
    %c0_2 = arith.constant 0 : index
    %2 = vector.load %arg2[%c0_1, %c0_2] : memref<64x192xbf16, #tpu.memory_space<vmem>>, vector<64x192xbf16>
    %cst = arith.constant dense<0.000000e+00> : vector<16x192xf32>
    %3 = tpu.matmul %1, %2, %cst {dimension_numbers = #tpu.dot_dimension_numbers<[1], [0], [0], [1], [0, 0, 1, 1], [], []>} : vector<16x64xbf16>, vector<64x192xbf16>, vector<16x192xf32> -> vector<16x192xf32>
    %c0_3 = arith.constant 0 : index
    %c0_4 = arith.constant 0 : index
    %4 = vector.load %arg3[%c0_3, %c0_4] : memref<1x192xf32, #tpu.memory_space<vmem>>, vector<1x192xf32>
    %5 = vector.shape_cast %4 : vector<1x192xf32> to vector<192xf32>
    %6 = vector.shape_cast %5 : vector<192xf32> to vector<1x192xf32>
    %7 = vector.broadcast %6 : vector<1x192xf32> to vector<16x192xf32>
    %8 = arith.addf %3, %7 : vector<16x192xf32>
    %9 = arith.truncf %8 : vector<16x192xf32> to vector<16x192xbf16>
    %c0_5 = arith.constant 0 : index
    %c0_6 = arith.constant 0 : index
    %10 = vector.load %arg4[%c0_5, %c0_6] : memref<16x192xbf16, #tpu.memory_space<vmem>>, vector<16x192xbf16>
    tpu.vector_store %arg4[%c0_5, %c0_6], %9 {strides = array<i32>} : memref<16x192xbf16, #tpu.memory_space<vmem>>, vector<16x192xbf16>,
    return
  }
  func.func @transform_0(%arg0: i32) -> (i32, i32) {
    %c0_i32 = arith.constant 0 : i32
    %c0_i32_0 = arith.constant 0 : i32
    return %arg0, %c0_i32 : i32, i32
  }
  func.func @transform_1(%arg0: i32) -> (i32, i32) {
    %c0_i32 = arith.constant 0 : i32
    %c0_i32_0 = arith.constant 0 : i32
    %c0_i32_1 = arith.constant 0 : i32
    return %c0_i32, %c0_i32_0 : i32, i32
  }
  func.func @transform_2(%arg0: i32) -> (i32, i32) {
    %c0_i32 = arith.constant 0 : i32
    %c0_i32_0 = arith.constant 0 : i32
    %c0_i32_1 = arith.constant 0 : i32
    return %c0_i32, %c0_i32_0 : i32, i32
  }
  func.func @transform_3(%arg0: i32) -> (i32, i32) {
    %c0_i32 = arith.constant 0 : i32
    %c0_i32_0 = arith.constant 0 : i32
    return %arg0, %c0_i32 : i32, i32
  }
}

module attributes {stable_mosaic.version = 11 : i64} {
  func.func @attention_kernel(%arg0: i32, %arg1: i32, %arg2: memref<1x4x16x16xbf16, #tpu.memory_space<vmem>>, %arg3: memref<1x4x32x16xbf16, #tpu.memory_space<vmem>>, %arg4: memref<1x4x32x16xbf16, #tpu.memory_space<vmem>>, %arg5: memref<1x4x16x16xbf16, #tpu.memory_space<vmem>>) attributes {dimension_semantics = [#tpu.dimension_semantics<parallel>, #tpu.dimension_semantics<parallel>], iteration_bounds = array<i64: 2, 2>, scalar_prefetch = 0 : i64, scratch_operands = 0 : i64, tpu.core_type = #tpu.core_type<tc>, window_params = [{transform_indices = @transform_0, window_bounds = array<i64: 1, 4, 16, 16>}, {transform_indices = @transform_1, window_bounds = array<i64: 1, 4, 32, 16>}, {transform_indices = @transform_2, window_bounds = array<i64: 1, 4, 32, 16>}, {transform_indices = @transform_3, window_bounds = array<i64: 1, 4, 16, 16>}]} {
    %c0 = arith.constant 0 : index
    %c0_0 = arith.constant 0 : index
    %c0_1 = arith.constant 0 : index
    %c0_2 = arith.constant 0 : index
    %0 = vector.load %arg2[%c0, %c0_0, %c0_1, %c0_2] : memref<1x4x16x16xbf16, #tpu.memory_space<vmem>>, vector<1x4x16x16xbf16>
    %1 = vector.shape_cast %0 : vector<1x4x16x16xbf16> to vector<4x16x16xbf16>
    %c0_3 = arith.constant 0 : index
    %c0_4 = arith.constant 0 : index
    %c0_5 = arith.constant 0 : index
    %c0_6 = arith.constant 0 : index
    %2 = vector.load %arg3[%c0_3, %c0_4, %c0_5, %c0_6] : memref<1x4x32x16xbf16, #tpu.memory_space<vmem>>, vector<1x4x32x16xbf16>
    %3 = vector.shape_cast %2 : vector<1x4x32x16xbf16> to vector<4x32x16xbf16>
    %c0_7 = arith.constant 0 : index
    %c0_8 = arith.constant 0 : index
    %c0_9 = arith.constant 0 : index
    %c0_10 = arith.constant 0 : index
    %4 = vector.load %arg4[%c0_7, %c0_8, %c0_9, %c0_10] : memref<1x4x32x16xbf16, #tpu.memory_space<vmem>>, vector<1x4x32x16xbf16>
    %5 = vector.shape_cast %4 : vector<1x4x32x16xbf16> to vector<4x32x16xbf16>
    "tpu.trace_start"() <{level = 10 : i32, message = "hqd,hkd->hqk"}> : () -> ()
    %cst = arith.constant dense<0.000000e+00> : vector<4x16x32xf32>
    %6 = tpu.matmul %1, %3, %cst {dimension_numbers = #tpu.dot_dimension_numbers<[2], [2], [1], [1], [0, 0, 0, 1, 1, 1], [0], [0]>} : vector<4x16x16xbf16>, vector<4x32x16xbf16>, vector<4x16x32xf32> -> vector<4x16x32xf32>
    "tpu.trace_stop"() : () -> ()
    %cst_11 = arith.constant 2.500000e-01 : f32
    %7 = vector.broadcast %cst_11 : f32 to vector<4x16x32xf32>
    %8 = arith.mulf %6, %7 : vector<4x16x32xf32>
    %cst_12 = arith.constant dense<0xFF800000> : vector<4x16xf32>
    %9 = vector.multi_reduction <maximumf>, %8, %cst_12 [2] : vector<4x16x32xf32> to vector<4x16xf32>
    %10 = vector.shape_cast %9 : vector<4x16xf32> to vector<4x16x1xf32>
    %11 = vector.broadcast %10 : vector<4x16x1xf32> to vector<4x16x32xf32>
    %12 = arith.subf %8, %11 : vector<4x16x32xf32>
    %13 = math.exp %12 : vector<4x16x32xf32>
    %cst_13 = arith.constant dense<0.000000e+00> : vector<4x16xf32>
    %14 = vector.multi_reduction <add>, %13, %cst_13 [2] : vector<4x16x32xf32> to vector<4x16xf32>
    %15 = vector.shape_cast %14 : vector<4x16xf32> to vector<4x16x1xf32>
    %16 = tpu.reciprocal %15 {approx = true} : vector<4x16x1xf32> -> vector<4x16x1xf32>
    %17 = vector.broadcast %16 : vector<4x16x1xf32> to vector<4x16x32xf32>
    %18 = arith.mulf %13, %17 : vector<4x16x32xf32>
    %19 = arith.truncf %18 : vector<4x16x32xf32> to vector<4x16x32xbf16>
    "tpu.trace_start"() <{level = 10 : i32, message = "hqk,hkd->hqd"}> : () -> ()
    %cst_14 = arith.constant dense<0.000000e+00> : vector<4x16x16xf32>
    %20 = tpu.matmul %19, %5, %cst_14 {dimension_numbers = #tpu.dot_dimension_numbers<[2], [1], [1], [2], [0, 0, 0, 1, 1, 2], [0], [0]>} : vector<4x16x32xbf16>, vector<4x32x16xbf16>, vector<4x16x16xf32> -> vector<4x16x16xf32>
    "tpu.trace_stop"() : () -> ()
    %21 = arith.truncf %20 : vector<4x16x16xf32> to vector<4x16x16xbf16>
    %c0_15 = arith.constant 0 : index
    %c0_16 = arith.constant 0 : index
    %c0_17 = arith.constant 0 : index
    %c0_18 = arith.constant 0 : index
    %22 = vector.load %arg5[%c0_15, %c0_16, %c0_17, %c0_18] : memref<1x4x16x16xbf16, #tpu.memory_space<vmem>>, vector<1x4x16x16xbf16>
    %23 = vector.shape_cast %22 : vector<1x4x16x16xbf16> to vector<4x16x16xbf16>
    %24 = vector.shape_cast %21 : vector<4x16x16xbf16> to vector<1x4x16x16xbf16>
    tpu.vector_store %arg5[%c0_15, %c0_16, %c0_17, %c0_18], %24 {strides = array<i32>} : memref<1x4x16x16xbf16, #tpu.memory_space<vmem>>, vector<1x4x16x16xbf16>,
    return
  }
  func.func @transform_0(%arg0: i32, %arg1: i32) -> (i32, i32, i32, i32) {
    %c0_i32 = arith.constant 0 : i32
    %c0_i32_0 = arith.constant 0 : i32
    %c0_i32_1 = arith.constant 0 : i32
    return %arg0, %c0_i32, %arg1, %c0_i32_0 : i32, i32, i32, i32
  }
  func.func @transform_1(%arg0: i32, %arg1: i32) -> (i32, i32, i32, i32) {
    %c0_i32 = arith.constant 0 : i32
    %c0_i32_0 = arith.constant 0 : i32
    %c0_i32_1 = arith.constant 0 : i32
    %c0_i32_2 = arith.constant 0 : i32
    return %arg0, %c0_i32, %c0_i32_0, %c0_i32_1 : i32, i32, i32, i32
  }
  func.func @transform_2(%arg0: i32, %arg1: i32) -> (i32, i32, i32, i32) {
    %c0_i32 = arith.constant 0 : i32
    %c0_i32_0 = arith.constant 0 : i32
    %c0_i32_1 = arith.constant 0 : i32
    %c0_i32_2 = arith.constant 0 : i32
    return %arg0, %c0_i32, %c0_i32_0, %c0_i32_1 : i32, i32, i32, i32
  }
  func.func @transform_3(%arg0: i32, %arg1: i32) -> (i32, i32, i32, i32) {
    %c0_i32 = arith.constant 0 : i32
    %c0_i32_0 = arith.constant 0 : i32
    %c0_i32_1 = arith.constant 0 : i32
    return %arg0, %c0_i32, %arg1, %c0_i32_0 : i32, i32, i32, i32
  }
}

module attributes {stable_mosaic.version = 11 : i64} {
  func.func @head_kernel(%arg0: i32, %arg1: i32, %arg2: memref<16x64xf32, #tpu.memory_space<vmem>>, %arg3: memref<1x64xf32, #tpu.memory_space<vmem>>, %arg4: memref<1x64xf32, #tpu.memory_space<vmem>>, %arg5: memref<64x128xbf16, #tpu.memory_space<vmem>>, %arg6: memref<1x128xf32, #tpu.memory_space<vmem>>, %arg7: memref<16x128xf32, #tpu.memory_space<vmem>>) attributes {dimension_semantics = [#tpu.dimension_semantics<parallel>, #tpu.dimension_semantics<parallel>], iteration_bounds = array<i64: 4, 2>, scalar_prefetch = 0 : i64, scratch_operands = 0 : i64, tpu.core_type = #tpu.core_type<tc>, window_params = [{transform_indices = @transform_0, window_bounds = array<i64: 16, 64>}, {pipeline_mode = #tpu.pipeline_mode<synchronous>, transform_indices = @transform_1, window_bounds = array<i64: 1, 64>}, {pipeline_mode = #tpu.pipeline_mode<synchronous>, transform_indices = @transform_2, window_bounds = array<i64: 1, 64>}, {transform_indices = @transform_3, window_bounds = array<i64: 64, 128>}, {transform_indices = @transform_4, window_bounds = array<i64: 1, 128>}, {transform_indices = @transform_5, window_bounds = array<i64: 16, 128>}]} {
    %c0 = arith.constant 0 : index
    %c0_0 = arith.constant 0 : index
    %0 = vector.load %arg2[%c0, %c0_0] : memref<16x64xf32, #tpu.memory_space<vmem>>, vector<16x64xf32>
    %c0_1 = arith.constant 0 : index
    %c0_2 = arith.constant 0 : index
    %1 = vector.load %arg3[%c0_1, %c0_2] : memref<1x64xf32, #tpu.memory_space<vmem>>, vector<1x64xf32>
    %2 = vector.shape_cast %1 : vector<1x64xf32> to vector<64xf32>
    %c0_3 = arith.constant 0 : index
    %c0_4 = arith.constant 0 : index
    %3 = vector.load %arg4[%c0_3, %c0_4] : memref<1x64xf32, #tpu.memory_space<vmem>>, vector<1x64xf32>
    %4 = vector.shape_cast %3 : vector<1x64xf32> to vector<64xf32>
    %cst = arith.constant dense<0.000000e+00> : vector<16xf32>
    %5 = vector.multi_reduction <add>, %0, %cst [1] : vector<16x64xf32> to vector<16xf32>
    %6 = vector.shape_cast %5 : vector<16xf32> to vector<16x1xf32>
    %cst_5 = arith.constant 6.400000e+01 : f32
    %7 = vector.broadcast %cst_5 : f32 to vector<16x1xf32>
    %8 = arith.divf %6, %7 : vector<16x1xf32>
    %9 = vector.broadcast %8 : vector<16x1xf32> to vector<16x64xf32>
    %10 = arith.subf %0, %9 : vector<16x64xf32>
    %11 = arith.mulf %10, %10 : vector<16x64xf32>
    %cst_6 = arith.constant dense<0.000000e+00> : vector<16xf32>
    %12 = vector.multi_reduction <add>, %11, %cst_6 [1] : vector<16x64xf32> to vector<16xf32>
    %13 = vector.shape_cast %12 : vector<16xf32> to vector<16x1xf32>
    %cst_7 = arith.constant 6.400000e+01 : f32
    %14 = vector.broadcast %cst_7 : f32 to vector<16x1xf32>
    %15 = arith.divf %13, %14 : vector<16x1xf32>
    %16 = vector.broadcast %8 : vector<16x1xf32> to vector<16x64xf32>
    %17 = arith.subf %0, %16 : vector<16x64xf32>
    %cst_8 = arith.constant 9.99999974E-6 : f32
    %18 = vector.broadcast %cst_8 : f32 to vector<16x1xf32>
    %19 = arith.addf %15, %18 : vector<16x1xf32>
    %20 = math.rsqrt %19 : vector<16x1xf32>
    %21 = vector.broadcast %20 : vector<16x1xf32> to vector<16x64xf32>
    %22 = arith.mulf %17, %21 : vector<16x64xf32>
    %23 = vector.shape_cast %2 : vector<64xf32> to vector<1x64xf32>
    %24 = vector.broadcast %23 : vector<1x64xf32> to vector<16x64xf32>
    %25 = arith.mulf %22, %24 : vector<16x64xf32>
    %26 = vector.shape_cast %4 : vector<64xf32> to vector<1x64xf32>
    %27 = vector.broadcast %26 : vector<1x64xf32> to vector<16x64xf32>
    %28 = arith.addf %25, %27 : vector<16x64xf32>
    %29 = arith.truncf %28 : vector<16x64xf32> to vector<16x64xbf16>
    %c0_9 = arith.constant 0 : index
    %c0_10 = arith.constant 0 : index
    %30 = vector.load %arg5[%c0_9, %c0_10] : memref<64x128xbf16, #tpu.memory_space<vmem>>, vector<64x128xbf16>
    %cst_11 = arith.constant dense<0.000000e+00> : vector<16x128xf32>
    %31 = tpu.matmul %29, %30, %cst_11 {dimension_numbers = #tpu.dot_dimension_numbers<[1], [0], [0], [1], [0, 0, 1, 1], [], []>} : vector<16x64xbf16>, vector<64x128xbf16>, vector<16x128xf32> -> vector<16x128xf32>
    %c0_12 = arith.constant 0 : index
    %c0_13 = arith.constant 0 : index
    %32 = vector.load %arg6[%c0_12, %c0_13] : memref<1x128xf32, #tpu.memory_space<vmem>>, vector<1x128xf32>
    %33 = vector.shape_cast %32 : vector<1x128xf32> to vector<128xf32>
    %34 = vector.shape_cast %33 : vector<128xf32> to vector<1x128xf32>
    %35 = vector.broadcast %34 : vector<1x128xf32> to vector<16x128xf32>
    %36 = arith.addf %31, %35 : vector<16x128xf32>
    %c0_14 = arith.constant 0 : index
    %c0_15 = arith.constant 0 : index
    %37 = vector.load %arg7[%c0_14, %c0_15] : memref<16x128xf32, #tpu.memory_space<vmem>>, vector<16x128xf32>
    tpu.vector_store %arg7[%c0_14, %c0_15], %36 {strides = array<i32>} : memref<16x128xf32, #tpu.memory_space<vmem>>, vector<16x128xf32>,
    return
  }
  func.func @transform_0(%arg0: i32, %arg1: i32) -> (i32, i32) {
    %c0_i32 = arith.constant 0 : i32
    %c0_i32_0 = arith.constant 0 : i32
    return %arg0, %c0_i32 : i32, i32
  }
  func.func @transform_1(%arg0: i32, %arg1: i32) -> (i32, i32) {
    %c0_i32 = arith.constant 0 : i32
    %c0_i32_0 = arith.constant 0 : i32
    %c0_i32_1 = arith.constant 0 : i32
    return %c0_i32, %c0_i32_0 : i32, i32
  }
  func.func @transform_2(%arg0: i32, %arg1: i32) -> (i32, i32) {
    %c0_i32 = arith.constant 0 : i32
    %c0_i32_0 = arith.constant 0 : i32
    %c0_i32_1 = arith.constant 0 : i32
    return %c0_i32, %c0_i32_0 : i32, i32
  }
  func.func @transform_3(%arg0: i32, %arg1: i32) -> (i32, i32) {
    %c0_i32 = arith.constant 0 : i32
    %c0_i32_0 = arith.constant 0 : i32
    return %c0_i32, %arg1 : i32, i32
  }
  func.func @transform_4(%arg0: i32, %arg1: i32) -> (i32, i32) {
    %c0_i32 = arith.constant 0 : i32
    %c0_i32_0 = arith.constant 0 : i32
    return %c0_i32, %arg1 : i32, i32
  }
  func.func @transform_5(%arg0: i32, %arg1: i32) -> (i32, i32) {
    %c0_i32 = arith.constant 0 : i32
    return %arg0, %arg1 : i32, i32
  }
}

module attributes {stable_mosaic.version = 11 : i64} {
  func.func @block_tail_kernel(%arg0: i32, %arg1: i32, %arg2: memref<16x64xf32, #tpu.memory_space<vmem>>, %arg3: memref<16x64xbf16, #tpu.memory_space<vmem>>, %arg4: memref<64x64xbf16, #tpu.memory_space<vmem>>, %arg5: memref<1x64xf32, #tpu.memory_space<vmem>>, %arg6: memref<1x64xf32, #tpu.memory_space<vmem>>, %arg7: memref<1x64xf32, #tpu.memory_space<vmem>>, %arg8: memref<64x128xbf16, #tpu.memory_space<vmem>>, %arg9: memref<1x128xf32, #tpu.memory_space<vmem>>, %arg10: memref<128x64xbf16, #tpu.memory_space<vmem>>, %arg11: memref<1x64xf32, #tpu.memory_space<vmem>>, %arg12: memref<1x64xf32, #tpu.memory_space<vmem>>, %arg13: memref<1x64xf32, #tpu.memory_space<vmem>>, %arg14: memref<16x64xf32, #tpu.memory_space<vmem>>, %arg15: memref<16x64xf32, #tpu.memory_space<vmem>>, %arg16: memref<16x64xf32, #tpu.memory_space<vmem>>) attributes {dimension_semantics = [#tpu.dimension_semantics<parallel>, #tpu.dimension_semantics<arbitrary>], iteration_bounds = array<i64: 4, 2>, scalar_prefetch = 0 : i64, scratch_operands = 2 : i64, tpu.core_type = #tpu.core_type<tc>, window_params = [{transform_indices = @transform_0, window_bounds = array<i64: 16, 64>}, {transform_indices = @transform_1, window_bounds = array<i64: 16, 64>}, {pipeline_mode = #tpu.pipeline_mode<synchronous>, transform_indices = @transform_2, window_bounds = array<i64: 64, 64>}, {pipeline_mode = #tpu.pipeline_mode<synchronous>, transform_indices = @transform_3, window_bounds = array<i64: 1, 64>}, {pipeline_mode = #tpu.pipeline_mode<synchronous>, transform_indices = @transform_4, window_bounds = array<i64: 1, 64>}, {pipeline_mode = #tpu.pipeline_mode<synchronous>, transform_indices = @transform_5, window_bounds = array<i64: 1, 64>}, {transform_indices = @transform_6, window_bounds = array<i64: 64, 128>}, {transform_indices = @transform_7, window_bounds = array<i64: 1, 128>}, {transform_indices = @transform_8, window_bounds = array<i64: 128, 64>}, {pipeline_mode = #tpu.pipeline_mode<synchronous>, transform_indices = @transform_9, window_bounds = array<i64: 1, 64>}, {pipeline_mode = #tpu.pipeline_mode<synchronous>, transform_indices = @transform_10, window_bounds = array<i64: 1, 64>}, {pipeline_mode = #tpu.pipeline_mode<synchronous>, transform_indices = @transform_11, window_bounds = array<i64: 1, 64>}, {transform_indices = @transform_12, window_bounds = array<i64: 16, 64>}]} {
    %c0_i32 = arith.constant 0 : i32
    %0 = arith.cmpi eq, %arg1, %c0_i32 : i32
    %1 = arith.extui %0 : i1 to i32
    %c0_i32_0 = arith.constant 0 : i32
    %2 = arith.cmpi ne, %1, %c0_i32_0 : i32
    scf.if %2 {
      %c0_17 = arith.constant 0 : index
      %c0_18 = arith.constant 0 : index
      %30 = vector.load %arg3[%c0_17, %c0_18] : memref<16x64xbf16, #tpu.memory_space<vmem>>, vector<16x64xbf16>
      %c0_19 = arith.constant 0 : index
      %c0_20 = arith.constant 0 : index
      %31 = vector.load %arg4[%c0_19, %c0_20] : memref<64x64xbf16, #tpu.memory_space<vmem>>, vector<64x64xbf16>
      %cst_21 = arith.constant dense<0.000000e+00> : vector<16x64xf32>
      %32 = tpu.matmul %30, %31, %cst_21 {dimension_numbers = #tpu.dot_dimension_numbers<[1], [0], [0], [1], [0, 0, 1, 1], [], []>} : vector<16x64xbf16>, vector<64x64xbf16>, vector<16x64xf32> -> vector<16x64xf32>
      %c0_22 = arith.constant 0 : index
      %c0_23 = arith.constant 0 : index
      %33 = vector.load %arg5[%c0_22, %c0_23] : memref<1x64xf32, #tpu.memory_space<vmem>>, vector<1x64xf32>
      %34 = vector.shape_cast %33 : vector<1x64xf32> to vector<64xf32>
      %35 = vector.shape_cast %34 : vector<64xf32> to vector<1x64xf32>
      %36 = vector.broadcast %35 : vector<1x64xf32> to vector<16x64xf32>
      %37 = arith.addf %32, %36 : vector<16x64xf32>
      %c0_24 = arith.constant 0 : index
      %c0_25 = arith.constant 0 : index
      %38 = vector.load %arg2[%c0_24, %c0_25] : memref<16x64xf32, #tpu.memory_space<vmem>>, vector<16x64xf32>
      %39 = arith.addf %38, %37 : vector<16x64xf32>
      %c0_26 = arith.constant 0 : index
      %c0_27 = arith.constant 0 : index
      %40 = vector.load %arg6[%c0_26, %c0_27] : memref<1x64xf32, #tpu.memory_space<vmem>>, vector<1x64xf32>
      %41 = vector.shape_cast %40 : vector<1x64xf32> to vector<64xf32>
      %c0_28 = arith.constant 0 : index
      %c0_29 = arith.constant 0 : index
      %42 = vector.load %arg7[%c0_28, %c0_29] : memref<1x64xf32, #tpu.memory_space<vmem>>, vector<1x64xf32>
      %43 = vector.shape_cast %42 : vector<1x64xf32> to vector<64xf32>
      %cst_30 = arith.constant dense<0.000000e+00> : vector<16xf32>
      %44 = vector.multi_reduction <add>, %39, %cst_30 [1] : vector<16x64xf32> to vector<16xf32>
      %45 = vector.shape_cast %44 : vector<16xf32> to vector<16x1xf32>
      %cst_31 = arith.constant 6.400000e+01 : f32
      %46 = vector.broadcast %cst_31 : f32 to vector<16x1xf32>
      %47 = arith.divf %45, %46 : vector<16x1xf32>
      %48 = vector.broadcast %47 : vector<16x1xf32> to vector<16x64xf32>
      %49 = arith.subf %39, %48 : vector<16x64xf32>
      %50 = arith.mulf %49, %49 : vector<16x64xf32>
      %cst_32 = arith.constant dense<0.000000e+00> : vector<16xf32>
      %51 = vector.multi_reduction <add>, %50, %cst_32 [1] : vector<16x64xf32> to vector<16xf32>
      %52 = vector.shape_cast %51 : vector<16xf32> to vector<16x1xf32>
      %cst_33 = arith.constant 6.400000e+01 : f32
      %53 = vector.broadcast %cst_33 : f32 to vector<16x1xf32>
      %54 = arith.divf %52, %53 : vector<16x1xf32>
      %55 = vector.broadcast %47 : vector<16x1xf32> to vector<16x64xf32>
      %56 = arith.subf %39, %55 : vector<16x64xf32>
      %cst_34 = arith.constant 9.99999974E-6 : f32
      %57 = vector.broadcast %cst_34 : f32 to vector<16x1xf32>
      %58 = arith.addf %54, %57 : vector<16x1xf32>
      %59 = math.rsqrt %58 : vector<16x1xf32>
      %60 = vector.broadcast %59 : vector<16x1xf32> to vector<16x64xf32>
      %61 = arith.mulf %56, %60 : vector<16x64xf32>
      %62 = vector.shape_cast %41 : vector<64xf32> to vector<1x64xf32>
      %63 = vector.broadcast %62 : vector<1x64xf32> to vector<16x64xf32>
      %64 = arith.mulf %61, %63 : vector<16x64xf32>
      %65 = vector.shape_cast %43 : vector<64xf32> to vector<1x64xf32>
      %66 = vector.broadcast %65 : vector<1x64xf32> to vector<16x64xf32>
      %67 = arith.addf %64, %66 : vector<16x64xf32>
      %c0_35 = arith.constant 0 : index
      %c0_36 = arith.constant 0 : index
      %68 = vector.load %arg15[%c0_35, %c0_36] : memref<16x64xf32, #tpu.memory_space<vmem>>, vector<16x64xf32>
      tpu.vector_store %arg15[%c0_35, %c0_36], %67 {strides = array<i32>} : memref<16x64xf32, #tpu.memory_space<vmem>>, vector<16x64xf32>,
      %cst_37 = arith.constant 0.000000e+00 : f32
      %69 = vector.broadcast %cst_37 : f32 to vector<16x64xf32>
      %c0_38 = arith.constant 0 : index
      %c0_39 = arith.constant 0 : index
      %70 = vector.load %arg16[%c0_38, %c0_39] : memref<16x64xf32, #tpu.memory_space<vmem>>, vector<16x64xf32>
      tpu.vector_store %arg16[%c0_38, %c0_39], %69 {strides = array<i32>} : memref<16x64xf32, #tpu.memory_space<vmem>>, vector<16x64xf32>,
    } else {
    }
    %c0 = arith.constant 0 : index
    %c0_1 = arith.constant 0 : index
    %3 = vector.load %arg15[%c0, %c0_1] : memref<16x64xf32, #tpu.memory_space<vmem>>, vector<16x64xf32>
    %4 = arith.truncf %3 : vector<16x64xf32> to vector<16x64xbf16>
    %c0_2 = arith.constant 0 : index
    %c0_3 = arith.constant 0 : index
    %5 = vector.load %arg8[%c0_2, %c0_3] : memref<64x128xbf16, #tpu.memory_space<vmem>>, vector<64x128xbf16>
    %cst = arith.constant dense<0.000000e+00> : vector<16x128xf32>
    %6 = tpu.matmul %4, %5, %cst {dimension_numbers = #tpu.dot_dimension_numbers<[1], [0], [0], [1], [0, 0, 1, 1], [], []>} : vector<16x64xbf16>, vector<64x128xbf16>, vector<16x128xf32> -> vector<16x128xf32>
    %c0_4 = arith.constant 0 : index
    %c0_5 = arith.constant 0 : index
    %7 = vector.load %arg9[%c0_4, %c0_5] : memref<1x128xf32, #tpu.memory_space<vmem>>, vector<1x128xf32>
    %8 = vector.shape_cast %7 : vector<1x128xf32> to vector<128xf32>
    %9 = vector.shape_cast %8 : vector<128xf32> to vector<1x128xf32>
    %10 = vector.broadcast %9 : vector<1x128xf32> to vector<16x128xf32>
    %11 = arith.addf %6, %10 : vector<16x128xf32>
    %cst_6 = arith.constant 5.000000e-01 : f32
    %12 = vector.broadcast %cst_6 : f32 to vector<16x128xf32>
    %13 = arith.mulf %12, %11 : vector<16x128xf32>
    %cst_7 = arith.constant 2.000000e+00 : f32
    %14 = math.sqrt %cst_7 : f32
    %15 = vector.broadcast %14 : f32 to vector<16x128xf32>
    %16 = arith.divf %11, %15 : vector<16x128xf32>
    %17 = math.erf %16 : vector<16x128xf32>
    %cst_8 = arith.constant 1.000000e+00 : f32
    %18 = vector.broadcast %cst_8 : f32 to vector<16x128xf32>
    %19 = arith.addf %18, %17 : vector<16x128xf32>
    %20 = arith.mulf %13, %19 : vector<16x128xf32>
    %c0_9 = arith.constant 0 : index
    %c0_10 = arith.constant 0 : index
    %21 = vector.load %arg16[%c0_9, %c0_10] : memref<16x64xf32, #tpu.memory_space<vmem>>, vector<16x64xf32>
    %22 = arith.truncf %20 : vector<16x128xf32> to vector<16x128xbf16>
    %c0_11 = arith.constant 0 : index
    %c0_12 = arith.constant 0 : index
    %23 = vector.load %arg10[%c0_11, %c0_12] : memref<128x64xbf16, #tpu.memory_space<vmem>>, vector<128x64xbf16>
    %cst_13 = arith.constant dense<0.000000e+00> : vector<16x64xf32>
    %24 = tpu.matmul %22, %23, %cst_13 {dimension_numbers = #tpu.dot_dimension_numbers<[1], [0], [0], [1], [0, 0, 1, 1], [], []>} : vector<16x128xbf16>, vector<128x64xbf16>, vector<16x64xf32> -> vector<16x64xf32>
    %25 = arith.addf %21, %24 : vector<16x64xf32>
    %c0_14 = arith.constant 0 : index
    %c0_15 = arith.constant 0 : index
    %26 = vector.load %arg16[%c0_14, %c0_15] : memref<16x64xf32, #tpu.memory_space<vmem>>, vector<16x64xf32>
    tpu.vector_store %arg16[%c0_14, %c0_15], %25 {strides = array<i32>} : memref<16x64xf32, #tpu.memory_space<vmem>>, vector<16x64xf32>,
    %c1_i32 = arith.constant 1 : i32
    %27 = arith.cmpi eq, %arg1, %c1_i32 : i32
    %28 = arith.extui %27 : i1 to i32
    %c0_i32_16 = arith.constant 0 : i32
    %29 = arith.cmpi ne, %28, %c0_i32_16 : i32
    scf.if %29 {
      %c0_17 = arith.constant 0 : index
      %c0_18 = arith.constant 0 : index
      %30 = vector.load %arg15[%c0_17, %c0_18] : memref<16x64xf32, #tpu.memory_space<vmem>>, vector<16x64xf32>
      %c0_19 = arith.constant 0 : index
      %c0_20 = arith.constant 0 : index
      %31 = vector.load %arg16[%c0_19, %c0_20] : memref<16x64xf32, #tpu.memory_space<vmem>>, vector<16x64xf32>
      %32 = arith.addf %30, %31 : vector<16x64xf32>
      %c0_21 = arith.constant 0 : index
      %c0_22 = arith.constant 0 : index
      %33 = vector.load %arg11[%c0_21, %c0_22] : memref<1x64xf32, #tpu.memory_space<vmem>>, vector<1x64xf32>
      %34 = vector.shape_cast %33 : vector<1x64xf32> to vector<64xf32>
      %35 = vector.shape_cast %34 : vector<64xf32> to vector<1x64xf32>
      %36 = vector.broadcast %35 : vector<1x64xf32> to vector<16x64xf32>
      %37 = arith.addf %32, %36 : vector<16x64xf32>
      %c0_23 = arith.constant 0 : index
      %c0_24 = arith.constant 0 : index
      %38 = vector.load %arg12[%c0_23, %c0_24] : memref<1x64xf32, #tpu.memory_space<vmem>>, vector<1x64xf32>
      %39 = vector.shape_cast %38 : vector<1x64xf32> to vector<64xf32>
      %c0_25 = arith.constant 0 : index
      %c0_26 = arith.constant 0 : index
      %40 = vector.load %arg13[%c0_25, %c0_26] : memref<1x64xf32, #tpu.memory_space<vmem>>, vector<1x64xf32>
      %41 = vector.shape_cast %40 : vector<1x64xf32> to vector<64xf32>
      %cst_27 = arith.constant dense<0.000000e+00> : vector<16xf32>
      %42 = vector.multi_reduction <add>, %37, %cst_27 [1] : vector<16x64xf32> to vector<16xf32>
      %43 = vector.shape_cast %42 : vector<16xf32> to vector<16x1xf32>
      %cst_28 = arith.constant 6.400000e+01 : f32
      %44 = vector.broadcast %cst_28 : f32 to vector<16x1xf32>
      %45 = arith.divf %43, %44 : vector<16x1xf32>
      %46 = vector.broadcast %45 : vector<16x1xf32> to vector<16x64xf32>
      %47 = arith.subf %37, %46 : vector<16x64xf32>
      %48 = arith.mulf %47, %47 : vector<16x64xf32>
      %cst_29 = arith.constant dense<0.000000e+00> : vector<16xf32>
      %49 = vector.multi_reduction <add>, %48, %cst_29 [1] : vector<16x64xf32> to vector<16xf32>
      %50 = vector.shape_cast %49 : vector<16xf32> to vector<16x1xf32>
      %cst_30 = arith.constant 6.400000e+01 : f32
      %51 = vector.broadcast %cst_30 : f32 to vector<16x1xf32>
      %52 = arith.divf %50, %51 : vector<16x1xf32>
      %53 = vector.broadcast %45 : vector<16x1xf32> to vector<16x64xf32>
      %54 = arith.subf %37, %53 : vector<16x64xf32>
      %cst_31 = arith.constant 9.99999974E-6 : f32
      %55 = vector.broadcast %cst_31 : f32 to vector<16x1xf32>
      %56 = arith.addf %52, %55 : vector<16x1xf32>
      %57 = math.rsqrt %56 : vector<16x1xf32>
      %58 = vector.broadcast %57 : vector<16x1xf32> to vector<16x64xf32>
      %59 = arith.mulf %54, %58 : vector<16x64xf32>
      %60 = vector.shape_cast %39 : vector<64xf32> to vector<1x64xf32>
      %61 = vector.broadcast %60 : vector<1x64xf32> to vector<16x64xf32>
      %62 = arith.mulf %59, %61 : vector<16x64xf32>
      %63 = vector.shape_cast %41 : vector<64xf32> to vector<1x64xf32>
      %64 = vector.broadcast %63 : vector<1x64xf32> to vector<16x64xf32>
      %65 = arith.addf %62, %64 : vector<16x64xf32>
      %c0_32 = arith.constant 0 : index
      %c0_33 = arith.constant 0 : index
      %66 = vector.load %arg14[%c0_32, %c0_33] : memref<16x64xf32, #tpu.memory_space<vmem>>, vector<16x64xf32>
      tpu.vector_store %arg14[%c0_32, %c0_33], %65 {strides = array<i32>} : memref<16x64xf32, #tpu.memory_space<vmem>>, vector<16x64xf32>,
    } else {
    }
    return
  }
  func.func @transform_0(%arg0: i32, %arg1: i32) -> (i32, i32) {
    %c0_i32 = arith.constant 0 : i32
    %c0_i32_0 = arith.constant 0 : i32
    return %arg0, %c0_i32 : i32, i32
  }
  func.func @transform_1(%arg0: i32, %arg1: i32) -> (i32, i32) {
    %c0_i32 = arith.constant 0 : i32
    %c0_i32_0 = arith.constant 0 : i32
    return %arg0, %c0_i32 : i32, i32
  }
  func.func @transform_2(%arg0: i32, %arg1: i32) -> (i32, i32) {
    %c0_i32 = arith.constant 0 : i32
    %c0_i32_0 = arith.constant 0 : i32
    %c0_i32_1 = arith.constant 0 : i32
    return %c0_i32, %c0_i32_0 : i32, i32
  }
  func.func @transform_3(%arg0: i32, %arg1: i32) -> (i32, i32) {
    %c0_i32 = arith.constant 0 : i32
    %c0_i32_0 = arith.constant 0 : i32
    %c0_i32_1 = arith.constant 0 : i32
    return %c0_i32, %c0_i32_0 : i32, i32
  }
  func.func @transform_4(%arg0: i32, %arg1: i32) -> (i32, i32) {
    %c0_i32 = arith.constant 0 : i32
    %c0_i32_0 = arith.constant 0 : i32
    %c0_i32_1 = arith.constant 0 : i32
    return %c0_i32, %c0_i32_0 : i32, i32
  }
  func.func @transform_5(%arg0: i32, %arg1: i32) -> (i32, i32) {
    %c0_i32 = arith.constant 0 : i32
    %c0_i32_0 = arith.constant 0 : i32
    %c0_i32_1 = arith.constant 0 : i32
    return %c0_i32, %c0_i32_0 : i32, i32
  }
  func.func @transform_6(%arg0: i32, %arg1: i32) -> (i32, i32) {
    %c0_i32 = arith.constant 0 : i32
    %c0_i32_0 = arith.constant 0 : i32
    return %c0_i32, %arg1 : i32, i32
  }
  func.func @transform_7(%arg0: i32, %arg1: i32) -> (i32, i32) {
    %c0_i32 = arith.constant 0 : i32
    %c0_i32_0 = arith.constant 0 : i32
    return %c0_i32, %arg1 : i32, i32
  }
  func.func @transform_8(%arg0: i32, %arg1: i32) -> (i32, i32) {
    %c0_i32 = arith.constant 0 : i32
    %c0_i32_0 = arith.constant 0 : i32
    return %arg1, %c0_i32 : i32, i32
  }
  func.func @transform_9(%arg0: i32, %arg1: i32) -> (i32, i32) {
    %c0_i32 = arith.constant 0 : i32
    %c0_i32_0 = arith.constant 0 : i32
    %c0_i32_1 = arith.constant 0 : i32
    return %c0_i32, %c0_i32_0 : i32, i32
  }
  func.func @transform_10(%arg0: i32, %arg1: i32) -> (i32, i32) {
    %c0_i32 = arith.constant 0 : i32
    %c0_i32_0 = arith.constant 0 : i32
    %c0_i32_1 = arith.constant 0 : i32
    return %c0_i32, %c0_i32_0 : i32, i32
  }
  func.func @transform_11(%arg0: i32, %arg1: i32) -> (i32, i32) {
    %c0_i32 = arith.constant 0 : i32
    %c0_i32_0 = arith.constant 0 : i32
    %c0_i32_1 = arith.constant 0 : i32
    return %c0_i32, %c0_i32_0 : i32, i32
  }
  func.func @transform_12(%arg0: i32, %arg1: i32) -> (i32, i32) {
    %c0_i32 = arith.constant 0 : i32
    %c0_i32_0 = arith.constant 0 : i32
    return %arg0, %c0_i32 : i32, i32
  }
}

</mosaic_0001>

<bundles_post_ra>
// kernel: gpt_forward.7
= control target key start
LH: loop header
LB: loop body
LE: loop exit
PB: predicated region body
PF: predicated region fallthrough
CT: control target
= control target key end

     0   :  { %s422_s12 = smov 0   ;;  %s490_s0 = inlined_call_operand.vmem [shape: f32[64,64], index: 0, kind: input, shape index: {}]   ;;  %s491_s1 = inlined_call_operand.vmem [shape: bf16[64,192], index: 1, kind: input, shape index: {}]   ;;  %s492_s2 = inlined_call_operand.vmem [shape: f32[1,192], index: 2, kind: input, shape index: {}]   ;;  %s493_s3 = inlined_call_operand.vmem [shape: bf16[64,192], index: 3, kind: output, shape index: {}]  }
   0x1 LB: > { %s331_s13 = sadd.s32 4294967295, %s400_s12   ;;  %p335_p0 = scmp.ge.s32.totalorder %s400_s12, 1  ;;  %s400_s12 = sphi %s422_s12, %s13_s12  }
   0x2   : > { %p138_p1 = scmp.lt.s32.totalorder %s400_s12, 5 }
   0x4   : > { %p139_p2 = pnand %p335_p0, %p138_p1 }
   0x5   : > { %s336_s11 = sshll.u32 (!%p139_p2), %s331_s13, 1 }
   0x6   : > { %142 = sbr.rel (%p139_p2) target bundleno = 169 (0xa9), region = 32  ;;  %p164_p3 = scmp.lt.s32.totalorder (!%p139_p2), %s336_s11, 7 }
   0xb   : > { %v367_v0 = vld [vmem:[%s491_s1 + $0x30] sm:$0xf]  ;;  %v385_v1 = vld [vmem:[%s491_s1 + $0x34] sm:$0xf0]  ;;  %v384_v2 = vld [vmem:[%s491_s1 + $0x34] sm:$0xf] }
   0xc   : > { %v368_v3 = vor.u32 %v385_v1, %v367_v0  ;;  %v369_v4 = vld [vmem:[%s491_s1 + $0x38] sm:$0xf0]  ;;  %v359_v5 = vld [vmem:[%s491_s1 + $0x20] sm:$0xf]  ;;  %v383_v6 = vld [vmem:[%s491_s1 + $0x24] sm:$0xf0] }
   0xd   : > { %v372_v7 = vor.u32 %v384_v2, %v369_v4  ;;  %v382_v8 = vld [vmem:[%s491_s1 + $0x24] sm:$0xf]  ;;  %v361_v9 = vld [vmem:[%s491_s1 + $0x28] sm:$0xf0]  ;;  %v360_v10 = vor.u32 %v383_v6, %v359_v5  ;;  %v351_v12 = vld [vmem:[%s491_s1 + $0x10] sm:$0xf] }
   0xe   : > { %242 = vmatpush.bf16.msra.mxu0 %v368_v3  ;;  %v364_v11 = vor.u32 %v382_v8, %v361_v9  ;;  %v381_v13 = vld [vmem:[%s491_s1 + $0x14] sm:$0xf0]  ;;  %v380_v14 = vld [vmem:[%s491_s1 + $0x14] sm:$0xf]  ;;  %v353_v15 = vld [vmem:[%s491_s1 + $0x18] sm:$0xf0] }
   0xf   : > { %256 = vmatpush.bf16.msra.mxu1 %v372_v7  ;;  %v352_v16 = vor.u32 %v381_v13, %v351_v12  ;;  %v356_v17 = vor.u32 %v380_v14, %v353_v15  ;;  %v343_v18 = vld [vmem:[%s491_s1] sm:$0xf]  ;;  %v379_v19 = vld [vmem:[%s491_s1 + $0x4] sm:$0xf0]  ;;  %s495_s11 = smov (!%p164_p3, %s336_s11), 7  ;;  %vm234_vm0 = vcmask 523264  }
  0x10   : > { %v378_v20 = vld [vmem:[%s491_s1 + $0x4] sm:$0xf]  ;;  %v345_v21 = vld [vmem:[%s491_s1 + $0x8] sm:$0xf0]  ;;  %s337_s21 = sshll.u32 %s495_s11, 3  ;;  %v344_v22 = vor.u32 %v379_v19, %v343_v18  ;;  %vm268_vm1 = vcmask 1043456  }
  0x11   : > { %s167_s24 = scalar_lea.vmem %s490_s0, %s337_s21  ;;  %v348_v23 = vor.u32 %v378_v20, %v345_v21  ;;  %v188_v27 = vld [vmem:[%s492_s2] sm:$0x3]  ;;  %vm269_vm2 = vcmask 523268   ;;  %s174_s29 = scalar_lea.vmem %s493_s3, %s337_s21 }
  0x12   : > { %243 = vmatpush.bf16.msra.mxu0 %v360_v10  ;;  %v177_v24 = vld [vmem:[%s167_s24] sm:$0xff]  ;;  %v178_v25 = vld [vmem:[%s167_s24 + $0x8] sm:$0xff]  ;;  %v190_v28 = vperm.slane %v188_v27, 0  ;;  %v191_v29 = vperm.slane %v188_v27, 1  ;;  %vm270_vm3 = vmor %vm269_vm2, %vm268_vm1 }
  0x13   : > { %257 = vmatpush.bf16.msra.mxu1 %v364_v11  ;;  %v179_v26 = vpack.c.bf16 %v178_v25, %v177_v24 }
  0x16   : > { %244 = vmatpush.bf16.msra.mxu0 %v352_v16 }
  0x17   : > { %258 = vmatpush.bf16.msra.mxu1 %v356_v17 }
  0x1a   : > { %245 = vmatpush.bf16.msra.mxu0 %v344_v22 }
  0x1b   : > { %259 = vmatpush.bf16.msra.mxu1 %v348_v23 }
  0x1d   : > { %373 = vmatmul.msk.bf16.vlgmr.msra.gmra.mxu0 %vm234_vm0, %v179_v26 }
  0x1e   : > { %374 = vmatmul.msk.bf16.vlgmr.msra.gmra.mxu1 %vm234_vm0, %v179_v26 }
  0x9a   : > { %v247_v30 = vpop.f32.mrf.mxu0 }
  0x9b   : > { %v248_v31 = vadd.f32 %v247_v30, %v190_v28  ;;  %v261_v32 = vpop.f32.mrf.mxu1 }
  0x9c   : > { %v262_v33 = vadd.f32 %v261_v32, %v191_v29 }
  0x9e   : > { %v266_v34 = vpack.c.bf16 %v262_v33, %v248_v31 }
  0xa0   : > { %271 = vst.msk [vmem:[%s174_s29] sm:$0xff] %vm270_vm3, %v266_v34 }
  0xa2   : > { %v249_v35 = vpop.f32.mrf.mxu0 }
  0xa3   : > { %v250_v36 = vadd.f32 %v249_v35, %v190_v28  ;;  %v263_v37 = vpop.f32.mrf.mxu1 }
  0xa4   : > { %v264_v38 = vadd.f32 %v263_v37, %v191_v29 }
  0xa6   : > { %v267_v39 = vpack.c.bf16 %v264_v38, %v250_v36 }
  0xa8   : > { %272 = vst.msk [vmem:[%s174_s29 + $0x8] sm:$0xff] %vm270_vm3, %v267_v39 }
  0xa9 PF: > { %s13_s12 = sadd.s32 1, %s400_s12  }
  0xaa   : > { %p10_p4 = scmp.ge.s32.totalorder %s13_s12, 6  }
  0xac   :  { %12 = sbr.rel (!%p10_p4) target bundleno = 1 (0x1), region = 62 }

// kernel: gpt_forward.8
= control target key start
LH: loop header
LB: loop body
LE: loop exit
PB: predicated region body
PF: predicated region fallthrough
CT: control target
= control target key end

     0   :  { %s1223_s12 = smov 0   ;;  %s1225_s13 = smov 0   ;;  %s1412_s0 = inlined_call_operand.vmem [shape: bf16[2,4,32,16], index: 0, kind: input, shape index: {}]   ;;  %s1413_s1 = inlined_call_operand.vmem [shape: bf16[2,4,32,16], index: 1, kind: input, shape index: {}]   ;;  %s1414_s2 = inlined_call_operand.vmem [shape: bf16[2,4,32,16], index: 2, kind: input, shape index: {}]   ;;  %s1415_s3 = inlined_call_operand.vmem [shape: bf16[2,4,32,16], index: 3, kind: output, shape index: {}]  }
   0x1   :  { %s1227_s14 = smov 0   ;;  %s1229_s15 = smov 0  }
   0x2   :  { %s1231_s16 = smov 0   ;;  %s1233_s17 = smov 0  }
   0x3   :  { %s1235_s18 = smov 0  }
   0x4 LB: > { %s22_s19 = sadd.s32 1, %s1193_s16  ;;  %s25_s20 = sadd.s32 1, %s1197_s17  ;;  %s1201_s18 = sphi %s1235_s18, %s13_s18   ;;  %s1197_s17 = sphi %s1233_s17, %s1422_s17   ;;  %s1193_s16 = sphi %s1231_s16, %s1421_s16   ;;  %s1189_s15 = sphi %s1229_s15, %s1420_s15   ;;  %s1185_s14 = sphi %s1227_s14, %s1419_s14   ;;  %s1181_s13 = sphi %s1225_s13, %s1418_s13   ;;  %s1177_s12 = sphi %s1223_s12, %s1417_s12  }
   0x5   : > { %p23_p0 = scmp.ge.s32.totalorder %s22_s19, 2  ;;  %s928_s21 = sadd.s32 4294967295, %s1201_s18  }
   0x6   : > { %p41_p1 = scmp.ne.s32.totalorder %s1181_s13, %s1177_s12  ;;  %p42_p2 = scmp.eq.s32.totalorder %s1201_s18, 0 }
   0x7   : > { %s1424_s19 = smov (%p23_p0, %s22_s19), 0  ;;  %s1426_s20 = smov (!%p23_p0, %s25_s20), %s1197_s17 }
   0x8   : > { %p27_p3 = scmp.ge.s32.totalorder %s1426_s20, 2  ;;  %p125_p4 = scmp.eq.s32.totalorder %s928_s21, 3 }
   0x9   : > { %s30_s22 = ssub.s32 %s1193_s16, %s1424_s19  ;;  %p43_p5 = por %p42_p2, %p41_p1 }
   0xa   : > { %s1428_s20 = smov (%p27_p3, %s1426_s20), 0  ;;  %p1271_p6 = por %p125_p4, %p41_p1 }
   0xb   : > { %s29_s24 = ssub.s32 %s1197_s17, %s1428_s20  ;;  %s34_s26 = sadd.s32 1, %s1181_s13 }
   0xc   : > { %s31_s25 = sor.u32 %s30_s22, %s29_s24  ;;  %p931_p8 = scmp.ge.s32.totalorder %s1201_s18, 4 }
   0xd   : > { %p32_p7 = scmp.eq.s32.totalorder %s31_s25, 0 }
   0xe   : > { %147 = sbr.rel (%p931_p8) target bundleno = 30 (0x1e), region = 16 }
   0xf   : > { %s1279_s27 = scalar_select %p32_p7, %s1181_s13, %s34_s26  }
  0x13   : > { %150 = sbr.rel (!%p43_p5) target bundleno = 30 (0x1e), region = 20  ;;  %s152_s28 = sand.u32 (%p43_p5), 1, %s1181_s13  }
  0x14   : > { %s933_s29 = sshll.u32 (%p43_p5), %s1193_s16, 1  ;;  %s932_s30 = sshll.u32 (%p43_p5), %s152_s28, 5 }
  0x15   : > { %s934_s4 = sshll.u32 (%p43_p5), %s1197_s17, 4  ;;  %s154_s10 = scalar_lea.vmem (%p43_p5), [#allocation2], %s932_s30 }
  0x16   : > { %s157_s5 = sadd.s32 (%p43_p5), %s934_s4, %s933_s29 }
  0x17   : > { %s935_s6 = sshll.u32 (%p43_p5), %s157_s5, 2 }
  0x18   : > { %s159_s9 = scalar_lea.vmem %s1412_s0, %s935_s6 }
  0x19   : > { %v176_v0 = vld [vmem:[%s159_s9] sm:$0xff]   ;;  %v180_v1 = vld [vmem:[%s159_s9 + $0x10] sm:$0xff]  }
  0x1a   : > { %v184_v2 = vld [vmem:[%s159_s9 + $0x20] sm:$0xff]   ;;  %177 = vst [vmem:[%s154_s10] sm:$0xff] %v176_v0   ;;  %v188_v3 = vld [vmem:[%s159_s9 + $0x30] sm:$0xff]  }
  0x1b   : > { %181 = vst [vmem:[%s154_s10 + $0x8] sm:$0xff] %v180_v1  }
  0x1c   : > { %185 = vst [vmem:[%s154_s10 + $0x10] sm:$0xff] %v184_v2  }
  0x1d   : > { %189 = vst [vmem:[%s154_s10 + $0x18] sm:$0xff] %v188_v3  }
  0x1e PF: > { %p936_p9 = scmp.ge.s32.totalorder %s1201_s18, 1  ;;  %p246_p10 = scmp.lt.s32.totalorder %s1201_s18, 5 }
  0x20   : > { %p247_p11 = pnand %p936_p9, %p246_p10 }
  0x21   : > { %p286_p12 = scmp.lt.s32.totalorder (!%p247_p11), %s1189_s15, 1  ;;  %s253_s26 = sand.u32 (!%p247_p11), 1, %s1177_s12  }
  0x22   : > { %250 = sbr.rel (%p247_p11) target bundleno = 618 (0x26a), region = 69  ;;  %s1307_s28 = sshll.u32 (!%p247_p11), %s253_s26, 5 }
  0x23   : > { %s255_s29 = scalar_lea.vmem (!%p247_p11), [#allocation2], %s1307_s28  ;;  %s1362_s5 = scalar_lea.vmem (!%p247_p11), [#allocation3], %s1307_s28 }
  0x27   : > { %s1292_s11 = scalar_select %p286_p12, %s1189_s15, 1  ;;  %vm353_vm0 = vcmask 130048   ;;  %v1039_v20 = vld [vmem:[%s255_s29] sm:$0xff]  ;;  %v1041_v21 = vld [vmem:[%s255_s29 + $0x10] sm:$0xff]  ;;  %v1042_v22 = vld [vmem:[%s255_s29 + $0x18] sm:$0xff]  ;;  %vm499_vm1 = vcmask 261120  }
  0x28   : > { %v1040_v23 = vld [vmem:[%s255_s29 + $0x8] sm:$0xff]  ;;  %vm740_vm2 = vcmask 125952   ;;  %s1032_s6 = sshll.u32 (%p1271_p6), %s1185_s14, 1  ;;  %s1033_s7 = sshll.u32 (%p1271_p6), %s1189_s15, 4 }
  0x29   : > { %s1037_s21 = sshll.u32 %s1292_s11, 6  ;;  %s758_s8 = sadd.s32 (%p1271_p6), %s1033_s7, %s1032_s6 }
  0x2a   : > { %s290_s25 = scalar_lea.vmem %s1413_s1, %s1037_s21  ;;  %s295_s4 = scalar_lea.vmem %s1414_s2, %s1037_s21 }
  0x2b   : > { %v1044_v4 = vld [vmem:[%s290_s25 + $0x8] sm:$0xff]  ;;  %v1050_v6 = vld [vmem:[%s290_s25 + $0x38] sm:$0xff]  ;;  %v1043_v12 = vld [vmem:[%s290_s25] sm:$0xff]  ;;  %s1034_s9 = sshll.u32 (%p1271_p6), %s758_s8, 2 }
  0x2c   : > { %v1048_v5 = vld [vmem:[%s290_s25 + $0x28] sm:$0xff]  ;;  %v1046_v7 = vld [vmem:[%s290_s25 + $0x18] sm:$0xff]  ;;  %v361_v8 = vsel %vm353_vm0, %v1044_v4, 0  ;;  %v475_v10 = vsel %vm353_vm0, %v1050_v6, 0  ;;  %v1047_v13 = vld [vmem:[%s290_s25 + $0x20] sm:$0xff]  ;;  %v358_v16 = vsel %vm353_vm0, %v1043_v12, 0  ;;  %s760_s21 = scalar_lea.vmem (%p1271_p6), %s1415_s3, %s1034_s9 }
  0x2d   : > { %v437_v9 = vsel %vm353_vm0, %v1048_v5, 0  ;;  %369 = vmatpush.bf16.xpose.msra.mxu0 %v361_v8  ;;  %v399_v11 = vsel %vm353_vm0, %v1046_v7, 0  ;;  %483 = vmatpush.bf16.xpose.msra.mxu3 %v475_v10  ;;  %v1049_v14 = vld [vmem:[%s290_s25 + $0x30] sm:$0xff]  ;;  %v434_v17 = vsel %vm353_vm0, %v1047_v13, 0 }
  0x2e   : > { %445 = vmatpush.bf16.xpose.msra.mxu2 %v437_v9  ;;  %407 = vmatpush.bf16.xpose.msra.mxu1 %v399_v11  ;;  %v1045_v15 = vld [vmem:[%s290_s25 + $0x10] sm:$0xff]  ;;  %v472_v18 = vsel %vm353_vm0, %v1049_v14, 0 }
  0x2f   : > { %v396_v19 = vsel %vm353_vm0, %v1045_v15, 0 }
  0x35   : > { %370 = vmatpush.bf16.xpose.msra.mxu0 %v358_v16  ;;  %484 = vmatpush.bf16.xpose.msra.mxu3 %v472_v18 }
  0x36   : > { %446 = vmatpush.bf16.xpose.msra.mxu2 %v434_v17  ;;  %408 = vmatpush.bf16.xpose.msra.mxu1 %v396_v19 }
  0x3c   : > { %955 = vmatmul.msk.bf16.vlgmr.msra.gmra.mxu0 %vm353_vm0, %v1039_v20  ;;  %994 = vmatmul.msk.bf16.vlgmr.msra.gmra.mxu3 %vm353_vm0, %v1042_v22 }
  0x3d   : > { %981 = vmatmul.msk.bf16.vlgmr.msra.gmra.mxu2 %vm353_vm0, %v1041_v21  ;;  %968 = vmatmul.msk.bf16.vlgmr.msra.gmra.mxu1 %vm353_vm0, %v1040_v23 }
  0xb9   : > { %v372_v24 = vpop.f32.mrf.mxu0 }
  0xba   : > { %v491_v25 = vmul.f32 0.25, %v372_v24  ;;  %v410_v32 = vpop.f32.mrf.mxu1  ;;  %v1056_v24 = vld [vmem:[%s295_s4 + $0x28] sm:$0xff] }
  0xbb   : > { %v493_v44 = vmul.f32 0.25, %v410_v32  ;;  %690 = vmatpush.bf16.msrb.mxu2 %v1056_v24 }
  0xbc   : > { %v500_v26 = vsel %vm499_vm1, %v491_v25, -inf }
  0xbd   : > { %501 = vmax.xlane.f32.xlu2 %v500_v26  ;;  %v506_v46 = vsel %vm499_vm1, %v493_v44, -inf  ;;  %v1052_v26 = vld [vmem:[%s295_s4 + $0x8] sm:$0xff] }
  0xbe   : > { %622 = vmatpush.bf16.msrb.mxu0 %v1052_v26 }
  0xbf   : > { %v486_v29 = vpop.f32.mrf.mxu3 }
  0xc0   : > { %v448_v27 = vpop.f32.mrf.mxu2  ;;  %v497_v30 = vmul.f32 0.25, %v486_v29  ;;  %v1051_v29 = vld [vmem:[%s295_s4] sm:$0xff] }
  0xc1   : > { %v495_v28 = vmul.f32 0.25, %v448_v27  ;;  %v374_v31 = vpop.f32.mrf.mxu0  ;;  %v1055_v27 = vld [vmem:[%s295_s4 + $0x20] sm:$0xff] }
  0xc2   : > { %v492_v33 = vmul.f32 0.25, %v374_v31  ;;  %v518_v35 = vsel %vm499_vm1, %v497_v30, -inf  ;;  %v412_v43 = vpop.f32.mrf.mxu1  ;;  %691 = vmatpush.bf16.msrb.mxu2 %v1055_v27  ;;  %623 = vmatpush.bf16.msrb.mxu0 %v1051_v29  ;;  %v1053_v31 = vld [vmem:[%s295_s4 + $0x10] sm:$0xff] }
  0xc3   : > { %v512_v34 = vsel %vm499_vm1, %v495_v28, -inf  ;;  %519 = vmax.xlane.f32.xlu1 %v518_v35  ;;  %v494_v45 = vmul.f32 0.25, %v412_v43 }
  0xc4   : > { %513 = vmax.xlane.f32.xlu0 %v512_v34  ;;  %v503_v36 = vsel %vm499_vm1, %v492_v33, -inf }
  0xc5   : > { %504 = vmax.xlane.f32.xlu2 %v503_v36  ;;  %v509_v47 = vsel %vm499_vm1, %v494_v45, -inf }
  0xc7   : > { %v488_v39 = vpop.f32.mrf.mxu3 }
  0xc8   : > { %v450_v37 = vpop.f32.mrf.mxu2  ;;  %v498_v40 = vmul.f32 0.25, %v488_v39 }
  0xc9   : > { %v496_v38 = vmul.f32 0.25, %v450_v37 }
  0xca   : > { %v521_v42 = vsel %vm499_vm1, %v498_v40, -inf }
  0xcb   : > { %v515_v41 = vsel %vm499_vm1, %v496_v38, -inf  ;;  %522 = vmax.xlane.f32.xlu1 %v521_v42 }
  0xcc   : > { %516 = vmax.xlane.f32.xlu0 %v515_v41 }
  0xd3   : > { %510 = vmax.xlane.f32.xlu1 %v509_v47 }
  0xd4   : > { %507 = vmax.xlane.f32.xlu0 %v506_v46 }
 0x130   : > { %v502_v48 = vpop.xlane.xlu2 %501 }
 0x131   : > { %v524_v49 = vsub.f32 %v491_v25, %v502_v48  ;;  %v1058_v25 = vld [vmem:[%s295_s4 + $0x38] sm:$0xff] }
 0x132   : > { %724 = vmatpush.bf16.msrb.mxu3 %v1058_v25 }
 0x133   : > { %v532_v50 = vmul.f32 1.442695, %v524_v49 }
 0x135   : > { %1115 = vpow2.f32 %v532_v50 }
 0x136   : > { %v520_v52 = vpop.xlane.xlu1 %519 }
 0x137   : > { %v514_v51 = vpop.xlane.xlu0 %513  ;;  %v530_v54 = vsub.f32 %v497_v30, %v520_v52  ;;  %v1054_v30 = vld [vmem:[%s295_s4 + $0x18] sm:$0xff] }
 0x138   : > { %v528_v53 = vsub.f32 %v495_v28, %v514_v51  ;;  %v505_v55 = vpop.xlane.xlu2 %504  ;;  %v1057_v28 = vld [vmem:[%s295_s4 + $0x30] sm:$0xff]  ;;  %656 = vmatpush.bf16.msrb.mxu1 %v1054_v30 }
 0x139   : > { %v544_v57 = vmul.f32 1.442695, %v530_v54  ;;  %v525_v58 = vsub.f32 %v492_v33, %v505_v55  ;;  %725 = vmatpush.bf16.msrb.mxu3 %v1057_v28 }
 0x13a   : > { %v540_v56 = vmul.f32 1.442695, %v528_v53 }
 0x13b   : > { %v1324_v59 = vpop.eup %1115  ;;  %v534_v61 = vmul.f32 1.442695, %v525_v58 }
 0x13c   : > { %1117 = vpow2.f32 %v540_v56  ;;  %v548_v60 = vsel %vm499_vm1, %v1324_v59, 0.0  ;;  %657 = vmatpush.bf16.msrb.mxu1 %v1053_v31 }
 0x13d   : > { %1119 = vpow2.f32 %v544_v57  ;;  %549 = vadd.xlane.f32.xlu0 %v548_v60 }
 0x13e   : > { %v523_v63 = vpop.xlane.xlu1 %522  ;;  %1121 = vpow2.f32 %v534_v61 }
 0x13f   : > { %v517_v62 = vpop.xlane.xlu0 %516  ;;  %v531_v1 = vsub.f32 %v498_v40, %v523_v63 }
 0x140   : > { %v529_v0 = vsub.f32 %v496_v38, %v517_v62 }
 0x141   : > { %v546_v5 = vmul.f32 1.442695, %v531_v1 }
 0x142   : > { %v1328_v2 = vpop.eup %1117  ;;  %v542_v3 = vmul.f32 1.442695, %v529_v0 }
 0x143   : > { %v1330_v4 = vpop.eup %1119  ;;  %v560_v6 = vsel %vm499_vm1, %v1328_v2, 0.0 }
 0x144   : > { %1123 = vpow2.f32 %v542_v3  ;;  %v566_v7 = vsel %vm499_vm1, %v1330_v4, 0.0  ;;  %561 = vadd.xlane.f32.xlu2 %v560_v6  ;;  %v1122_v11 = vpop.eup %1121 }
 0x145   : > { %1125 = vpow2.f32 %v546_v5  ;;  %567 = vadd.xlane.f32.xlu1 %v566_v7  ;;  %v551_v19 = vsel %vm499_vm1, %v1122_v11, 0.0 }
 0x146   : > { %v511_v10 = vpop.xlane.xlu1 %510 }
 0x147   : > { %v508_v8 = vpop.xlane.xlu0 %507  ;;  %v527_v12 = vsub.f32 %v494_v45, %v511_v10 }
 0x148   : > { %v526_v9 = vsub.f32 %v493_v44, %v508_v8 }
 0x149   : > { %v538_v16 = vmul.f32 1.442695, %v527_v12 }
 0x14a   : > { %v1124_v13 = vpop.eup %1123  ;;  %v536_v14 = vmul.f32 1.442695, %v526_v9 }
 0x14b   : > { %v1126_v15 = vpop.eup %1125  ;;  %v563_v17 = vsel %vm499_vm1, %v1124_v13, 0.0 }
 0x14c   : > { %1127 = vpow2.f32 %v536_v14  ;;  %564 = vadd.xlane.f32.xlu0 %v563_v17  ;;  %v569_v18 = vsel %vm499_vm1, %v1126_v15, 0.0 }
 0x14d   : > { %1129 = vpow2.f32 %v538_v16  ;;  %570 = vadd.xlane.f32.xlu2 %v569_v18  ;;  %552 = vadd.xlane.f32.xlu1 %v551_v19 }
 0x152   : > { %v1339_v20 = vpop.eup %1127 }
 0x153   : > { %v1341_v21 = vpop.eup %1129  ;;  %v554_v22 = vsel %vm499_vm1, %v1339_v20, 0.0 }
 0x154   : > { %v557_v23 = vsel %vm499_vm1, %v1341_v21, 0.0 }
 0x155   : > { %558 = vadd.xlane.f32.xlu0 %v557_v23  ;;  %555 = vadd.xlane.f32.xlu2 %v554_v22 }
 0x1b0   : > { %v550_v32 = vpop.xlane.xlu0 %549 }
 0x1b7   : > { %v562_v33 = vpop.xlane.xlu2 %561 }
 0x1b8   : > { %v568_v34 = vpop.xlane.xlu1 %567  ;;  %1131 = vrcp.f32 %v562_v33 }
 0x1b9   : > { %1133 = vrcp.f32 %v550_v32 }
 0x1ba   : > { %1135 = vrcp.f32 %v568_v34 }
 0x1be   : > { %v1132_v36 = vpop.eup %1131 }
 0x1bf   : > { %v565_v35 = vpop.xlane.xlu0 %564  ;;  %v1134_v39 = vpop.eup %1133  ;;  %v584_v41 = vmul.f32 %v1132_v36, %v1328_v2 }
 0x1c0   : > { %1137 = vrcp.f32 %v565_v35  ;;  %v553_v37 = vpop.xlane.xlu1 %552  ;;  %v571_v38 = vpop.xlane.xlu2 %570  ;;  %v580_v42 = vmul.f32 %v1134_v39, %v1324_v59 }
 0x1c1   : > { %1139 = vrcp.f32 %v553_v37  ;;  %v1136_v40 = vpop.eup %1135  ;;  %v592_v46 = vpack.c.bf16 %v584_v41, %v584_v41 }
 0x1c2   : > { %1141 = vrcp.f32 %v571_v38  ;;  %v586_v43 = vmul.f32 %v1136_v40, %v1330_v4  ;;  %v588_v49 = vpack.c.bf16 %v580_v42, %v580_v42 }
 0x1c3   : > { %v666_v57 = vunpack.c.l.b16 %v592_v46 }
 0x1c4   : > { %v594_v53 = vpack.c.bf16 %v586_v43, %v586_v43  ;;  %v598_v60 = vunpack.c.l.b16 %v588_v49 }
 0x1c6   : > { %v1138_v44 = vpop.eup %1137  ;;  %v700_v62 = vunpack.c.l.b16 %v594_v53 }
 0x1c7   : > { %v1140_v45 = vpop.eup %1139  ;;  %v585_v47 = vmul.f32 %v1138_v44, %v1124_v13 }
 0x1c8   : > { %v1142_v48 = vpop.eup %1141  ;;  %v581_v50 = vmul.f32 %v1140_v45, %v1122_v11  ;;  %v559_v51 = vpop.xlane.xlu0 %558 }
 0x1c9   : > { %v556_v52 = vpop.xlane.xlu2 %555  ;;  %v593_v54 = vpack.c.bf16 %v585_v47, %v585_v47  ;;  %v587_v55 = vmul.f32 %v1142_v48, %v1126_v15  ;;  %1143 = vrcp.f32 %v559_v51 }
 0x1ca   : > { %v589_v56 = vpack.c.bf16 %v581_v50, %v581_v50  ;;  %1145 = vrcp.f32 %v556_v52 }
 0x1cb   : > { %v667_v58 = vunpack.c.l.b16 %v593_v54  ;;  %v595_v59 = vpack.c.bf16 %v587_v55, %v587_v55 }
 0x1cc   : > { %v599_v61 = vunpack.c.l.b16 %v589_v56 }
 0x1cd   : > { %v701_v63 = vunpack.c.l.b16 %v595_v59  ;;  %v668_v0 = vpack.c.b16 %v667_v58, %v666_v57 }
 0x1ce   : > { %v600_v1 = vpack.c.b16 %v599_v61, %v598_v60 }
 0x1cf   : > { %v1144_v2 = vpop.eup %1143  ;;  %1021 = vmatmul.msk.bf16.vlgmr.msrb.gmra.mxu2 %vm499_vm1, %v668_v0  ;;  %v702_v3 = vpack.c.b16 %v701_v63, %v700_v62 }
 0x1d0   : > { %v1146_v4 = vpop.eup %1145  ;;  %v583_v5 = vmul.f32 %v1144_v2, %v1341_v21  ;;  %1003 = vmatmul.msk.bf16.vlgmr.msrb.gmra.mxu0 %vm499_vm1, %v600_v1 }
 0x1d1   : > { %v582_v6 = vmul.f32 %v1146_v4, %v1339_v20  ;;  %1030 = vmatmul.msk.bf16.vlgmr.msrb.gmra.mxu3 %vm499_vm1, %v702_v3 }
 0x1d2   : > { %v591_v7 = vpack.c.bf16 %v583_v5, %v583_v5 }
 0x1d3   : > { %v590_v8 = vpack.c.bf16 %v582_v6, %v582_v6 }
 0x1d4   : > { %v633_v9 = vunpack.c.l.b16 %v591_v7 }
 0x1d5   : > { %v632_v10 = vunpack.c.l.b16 %v590_v8 }
 0x1d7   : > { %v634_v11 = vpack.c.b16 %v633_v9, %v632_v10 }
 0x1d9   : > { %1012 = vmatmul.msk.bf16.vlgmr.msrb.gmra.mxu1 %vm499_vm1, %v634_v11 }
 0x24d   : > { %v625_v12 = vpop.f32.mrf.mxu0 }
 0x24e   : > { %v732_v13 = vpack.c.bf16 %v625_v12, %v625_v12 }
 0x250   : > { %741 = vst.msk [vmem:[%s1362_s5] sm:$0xf] %vm740_vm2, %v732_v13 }
 0x252   : > { %v693_v14 = vpop.f32.mrf.mxu2 }
 0x253   : > { %v736_v15 = vpack.c.bf16 %v693_v14, %v693_v14 }
 0x254   : > { %v727_v16 = vpop.f32.mrf.mxu3 }
 0x255   : > { %745 = vst.msk [vmem:[%s1362_s5 + $0x10] sm:$0xf] %vm740_vm2, %v736_v15  ;;  %v738_v17 = vpack.c.bf16 %v727_v16, %v727_v16  ;;  %v627_v18 = vpop.f32.mrf.mxu0 }
 0x256   : > { %v733_v19 = vpack.c.bf16 %v627_v18, %v627_v18  ;;  %v659_v20 = vpop.f32.mrf.mxu1 }
 0x257   : > { %747 = vst.msk [vmem:[%s1362_s5 + $0x18] sm:$0xf] %vm740_vm2, %v738_v17  ;;  %v734_v21 = vpack.c.bf16 %v659_v20, %v659_v20 }
 0x258   : > { %742 = vst.msk [vmem:[%s1362_s5 + $0x4] sm:$0xf] %vm740_vm2, %v733_v19 }
 0x259   : > { %743 = vst.msk [vmem:[%s1362_s5 + $0x8] sm:$0xf] %vm740_vm2, %v734_v21 }
 0x25a   : > { %v695_v22 = vpop.f32.mrf.mxu2 }
 0x25b   : > { %v737_v23 = vpack.c.bf16 %v695_v22, %v695_v22 }
 0x25c   : > { %v729_v24 = vpop.f32.mrf.mxu3 }
 0x25d   : > { %746 = vst.msk [vmem:[%s1362_s5 + $0x14] sm:$0xf] %vm740_vm2, %v737_v23  ;;  %v739_v25 = vpack.c.bf16 %v729_v24, %v729_v24  ;;  %755 = sbr.rel (!%p1271_p6) target bundleno = 618 (0x26a), region = 77 }
 0x25e   : > { %v661_v26 = vpop.f32.mrf.mxu1 }
 0x25f   : > { %748 = vst.msk [vmem:[%s1362_s5 + $0x1c] sm:$0xf] %vm740_vm2, %v739_v25  ;;  %v735_v27 = vpack.c.bf16 %v661_v26, %v661_v26  ;;  %v777_v28 = vld [vmem:[%s1362_s5] sm:$0xff] (%p1271_p6)  }
 0x260   : > { %778 = vst [vmem:[%s760_s21] sm:$0xff] (%p1271_p6), %v777_v28  }
 0x261   : > { %744 = vst.msk [vmem:[%s1362_s5 + $0xc] sm:$0xf] %vm740_vm2, %v735_v27 }
 0x264   : > { %v785_v30 = vld [vmem:[%s1362_s5 + $0x10] sm:$0xff]  }
 0x265   : > { %786 = vst [vmem:[%s760_s21 + $0x20] sm:$0xff] %v785_v30  }
 0x266   : > { %v789_v31 = vld [vmem:[%s1362_s5 + $0x18] sm:$0xff]  }
 0x267   : > { %790 = vst [vmem:[%s760_s21 + $0x30] sm:$0xff] %v789_v31  }
 0x268   : > { %v781_v29 = vld [vmem:[%s1362_s5 + $0x8] sm:$0xff]  }
 0x269   : > { %782 = vst [vmem:[%s760_s21 + $0x10] sm:$0xff] %v781_v29  }
 0x26a PF: > { %s13_s18 = sadd.s32 1, %s1201_s18   ;;  %s1417_s12 = smov %s1181_s13 }
 0x26b   : > { %p10_p13 = scmp.ge.s32.totalorder %s13_s18, 6   ;;  %s1418_s13 = smov %s1279_s27 }
 0x26c   : > { %s1419_s14 = smov %s1193_s16  ;;  %s1420_s15 = smov %s1197_s17 }
 0x26d   : > { %s1421_s16 = smov %s1424_s19  ;;  %s1422_s17 = smov %s1428_s20 }
 0x26e   :  { %12 = sbr.rel (!%p10_p13) target bundleno = 4 (0x4), region = 155 }

// kernel: gpt_forward.13
= control target key start
LH: loop header
LB: loop body
LE: loop exit
PB: predicated region body
PF: predicated region fallthrough
CT: control target
= control target key end

     0   :  { %s1052_s0 = inlined_call_operand.vmem [shape: f32[64,64], index: 0, kind: input, shape index: {}]   ;;  %s1053_s1 = inlined_call_operand.vmem [shape: f32[1,64], index: 1, kind: input, shape index: {}]   ;;  %s1054_s2 = inlined_call_operand.vmem [shape: f32[1,64], index: 2, kind: input, shape index: {}]   ;;  %s1055_s3 = inlined_call_operand.vmem [shape: bf16[64,256], index: 3, kind: input, shape index: {}]   ;;  %s1056_s4 = inlined_call_operand.vmem [shape: f32[1,256], index: 4, kind: input, shape index: {}]   ;;  %s1057_s5 = inlined_call_operand.hbm [shape: f32[64,256], index: 5, kind: output, shape index: {}]  }
   0x1   :  { %1058 = sst [smem:[#allocation6_spill]] %s1052_s0 }
   0x2   :  { %1059 = sst [smem:[#allocation7_spill]] %s1053_s1 }
   0x3   :  { %1060 = sst [smem:[#allocation8_spill]] %s1054_s2 }
   0x4   :  { %1061 = sst [smem:[#allocation9_spill]] %s1055_s3 }
   0x5   :  { %10 = vsyncpa [#allocation4], 0 }
   0x6   :  { %12 = vsyncpa [#allocation4 + $0x1], 0  ;;  %s873_s18 = smov 0   ;;  %s875_s19 = smov 0  }
   0x7   :  { %s877_s20 = smov 0   ;;  %s879_s21 = smov 0  }
   0x8   :  { %s881_s22 = smov 0   ;;  %s883_s23 = smov 0  }
   0x9   :  { %s885_s24 = smov 0   ;;  %s887_s25 = smov 0  }
   0xa   :  { %s889_s26 = smov 0   ;;  %s891_s27 = smov 0  }
   0xb LB: > { %s588_s28 = sadd.s32 4294967295, %s837_s27   ;;  %s589_s29 = sadd.s32 4294967294, %s837_s27   ;;  %s837_s27 = sphi %s891_s27, %s18_s27   ;;  %s833_s26 = sphi %s889_s26, %s1077_s26   ;;  %s829_s25 = sphi %s887_s25, %s1076_s25   ;;  %s825_s24 = sphi %s885_s24, %s1075_s24   ;;  %s821_s23 = sphi %s883_s23, %s1074_s23   ;;  %s817_s22 = sphi %s881_s22, %s1073_s22   ;;  %s813_s21 = sphi %s879_s21, %s1072_s21   ;;  %s809_s20 = sphi %s877_s20, %s1071_s20   ;;  %s805_s19 = sphi %s875_s19, %s1070_s19   ;;  %s801_s18 = sphi %s873_s18, %s1069_s18  }
   0xc   : > { %s27_s30 = sadd.s32 1, %s829_s25  ;;  %s30_s6 = sadd.s32 1, %s833_s26 }
   0xd   : > { %p28_p0 = scmp.ge.s32.totalorder %s27_s30, 2  ;;  %s105_s7 = sadd.s32 1, %s817_s22 }
   0xe   : > { %p112_p1 = scmp.ne.s32.totalorder %s817_s22, %s813_s21  ;;  %p113_p2 = scmp.eq.s32.totalorder %s837_s27, 0 }
   0xf   : > { %s1079_s30 = smov (%p28_p0, %s27_s30), 0  ;;  %s1081_s6 = smov (!%p28_p0, %s30_s6), %s833_s26 }
  0x10   : > { %s102_s8 = ssub.s32 %s829_s25, %s1079_s30  ;;  %p936_p3 = por %p113_p2, %p112_p1 }
  0x11   : > { %p32_p4 = scmp.ge.s32.totalorder %s1081_s6, 4  ;;  %p103_p5 = scmp.eq.s32.totalorder %s102_s8, 0 }
  0x12   : > { %s159_s10 = sadd.s32 1, %s809_s20  ;;  %p169_p6 = scmp.ne.s32.totalorder %s809_s20, %s805_s19 }
  0x13   : > { %s1083_s6 = smov (%p32_p4, %s1081_s6), 0  ;;  %p170_p7 = scmp.eq.s32.totalorder %s588_s28, 7 }
  0x14   : > { %s946_s11 = scalar_select %p103_p5, %s817_s22, %s105_s7  }
  0x15   : > { %s154_s12 = ssub.s32 %s833_s26, %s1083_s6  ;;  %p175_p8 = scmp.ne.s32.totalorder %s805_s19, %s801_s18 }
  0x16   : > { %s156_s13 = sor.u32 %s154_s12, %s102_s8  ;;  %p952_p10 = por %p170_p7, %p169_p6 }
  0x17   : > { %p157_p9 = scmp.eq.s32.totalorder %s156_s13, 0  ;;  %p176_p11 = scmp.eq.s32.totalorder %s589_s29, 7 }
  0x18   : > { %p591_p13 = scmp.ge.s32.totalorder %s837_s27, 8 }
  0x19   : > { %s957_s15 = scalar_select %p157_p9, %s809_s20, %s159_s10  }
  0x1a   : > { %p959_p12 = por %p176_p11, %p175_p8  ;;  %198 = sbr.rel (%p591_p13) target bundleno = 49 (0x31), region = 24 }
  0x1f   : > { %210 = sbr.rel (!%p936_p3) target bundleno = 49 (0x31), region = 32  ;;  %s212_s17 = sand.u32 (%p936_p3), 1, %s817_s22  }
  0x20   : > { %s593_s28 = sshll.u32 (%p936_p3), %s829_s25, 2  ;;  %s592_s7 = sshll.u32 (%p936_p3), %s212_s17, 5 }
  0x21   : > { %s1065_s3 = sld [smem:[#allocation9_spill]] (%p936_p3)  ;;  %s214_s10 = scalar_lea.vmem (%p936_p3), [#allocation2], %s592_s7 }
  0x27   : > { %s216_s29 = scalar_lea.vmem %s1065_s3, %s593_s28 }
  0x28   : > { %v233_v0 = vld [vmem:[%s216_s29] sm:$0xf]  ;;  %v235_v1 = vld [vmem:[%s216_s29 + $0x8] sm:$0xf]  ;;  %v237_v2 = vld [vmem:[%s216_s29 + $0x10] sm:$0xf] }
  0x29   : > { %234 = vst [vmem:[%s214_s10] sm:$0xf] %v233_v0  ;;  %v239_v3 = vld [vmem:[%s216_s29 + $0x18] sm:$0xf]  ;;  %v241_v4 = vld [vmem:[%s216_s29 + $0x20] sm:$0xf] }
  0x2a   : > { %236 = vst [vmem:[%s214_s10 + $0x4] sm:$0xf] %v235_v1  ;;  %v243_v5 = vld [vmem:[%s216_s29 + $0x28] sm:$0xf]  ;;  %v245_v6 = vld [vmem:[%s216_s29 + $0x30] sm:$0xf] }
  0x2b   : > { %238 = vst [vmem:[%s214_s10 + $0x8] sm:$0xf] %v237_v2  ;;  %v247_v7 = vld [vmem:[%s216_s29 + $0x38] sm:$0xf] }
  0x2c   : > { %240 = vst [vmem:[%s214_s10 + $0xc] sm:$0xf] %v239_v3 }
  0x2d   : > { %242 = vst [vmem:[%s214_s10 + $0x10] sm:$0xf] %v241_v4 }
  0x2e   : > { %244 = vst [vmem:[%s214_s10 + $0x14] sm:$0xf] %v243_v5 }
  0x2f   : > { %246 = vst [vmem:[%s214_s10 + $0x18] sm:$0xf] %v245_v6 }
  0x30   : > { %248 = vst [vmem:[%s214_s10 + $0x1c] sm:$0xf] %v247_v7 }
  0x31 PF: > { %p594_p0 = scmp.ge.s32.totalorder %s837_s27, 1  ;;  %p293_p1 = scmp.lt.s32.totalorder %s837_s27, 9 }
  0x33   : > { %p294_p2 = pnand %p594_p0, %p293_p1 }
  0x34   : > { %s597_s9 = sshll.u32 (!%p294_p2), %s825_s24, 1  ;;  %s1066_s0 = sld [smem:[#allocation6_spill]] (!%p294_p2) }
  0x35   : > { %297 = sbr.rel (%p294_p2) target bundleno = 481 (0x1e1), region = 77  ;;  %p336_p3 = scmp.lt.s32.totalorder (!%p294_p2), %s597_s9, 7 }
  0x36   : > { %p341_p4 = scmp.lt.s32.totalorder (!%p294_p2), %s821_s23, 1  ;;  %s1067_s1 = sld [smem:[#allocation7_spill]] (!%p294_p2) }
  0x37   : > { %s1068_s2 = sld [smem:[#allocation8_spill]] (!%p294_p2)  ;;  %s626_s29 = sshll.u32 (!%p294_p2), %s825_s24, 2 }
  0x3a   : > { %s1085_s9 = smov (!%p336_p3, %s597_s9), 7  ;;  %vm350_vm0 = vcmask 523264   ;;  %v839_v12 = vmov 64.0  }
  0x3b   : > { %s598_s13 = sshll.u32 %s1085_s9, 3  ;;  %721 = vrcp.f32 %v839_v12  ;;  %s300_s9 = sand.u32 1, %s813_s21  }
  0x3c   : > { %s339_s7 = scalar_lea.vmem %s1066_s0, %s598_s13  ;;  %s595_s13 = sshll.u32 %s300_s9, 5  ;;  %v718_v52 = vld [vmem:[%s1067_s1] ss:$0 sm:$0xff] }
  0x3d   : > { %v346_v8 = vld [vmem:[%s339_s7] sm:$0xff]  ;;  %v347_v10 = vld [vmem:[%s339_s7 + $0x8] sm:$0xff]  ;;  %s983_s8 = scalar_select %p341_p4, %s821_s23, 1 }
  0x3e   : > { %v351_v9 = vsel %vm350_vm0, %v346_v8, 0.0  ;;  %v354_v11 = vsel %vm350_vm0, %v347_v10, 0.0  ;;  %s302_s17 = scalar_lea.vmem [#allocation2], %s595_s13  ;;  %v719_v57 = vld [vmem:[%s1068_s2] ss:$0 sm:$0xff]  ;;  %s332_s9 = sand.u32 1, %s805_s19  }
  0x3f   : > { %352 = vadd.xlane.f32.xlu0 %v351_v9  ;;  %s343_s10 = scalar_lea.vmem %s1056_s4, %s983_s8  ;;  %v625_v29 = vld [vmem:[%s302_s17 + $0x18] sm:$0xff]  ;;  %v624_v30 = vld [vmem:[%s302_s17 + $0x10] sm:$0xff]  ;;  %v623_v31 = vld [vmem:[%s302_s17 + $0x8] sm:$0xff]  ;;  %s480_s13 = sadd.s32 %s821_s23, %s626_s29 }
  0x40   : > { %456 = vmatpush.bf16.msra.mxu0 %v625_v29  ;;  %v622_v33 = vld [vmem:[%s302_s17] sm:$0xff]  ;;  %s596_s17 = sshll.u32 %s332_s9, 4  ;;  %s619_s0 = sshll.u32 %s480_s13, 3 }
  0x41   : > { %v722_v13 = vpop.eup %721  ;;  %v720_v62 = vld [vmem:[%s343_s10] ss:$0 sm:$0xff]  ;;  %s482_s1 = scalar_lea.hbm %s1057_s5, %s619_s0  ;;  %s334_s2 = scalar_lea.vmem [#allocation3], %s596_s17 }
  0x42   : > { %v358_v14 = vmul.f32 64.0, %v722_v13  ;;  %vm362_vm1 = vweird.f32 %v722_v13  ;;  %s483_s3 = sshll.u32 %s334_s2, 4  ;;  %s485_s24 = sshll.u32 %s482_s1, 4  ;;  %s484_s3 = int_to_ptr.vmem [resolvable:$true] %s483_s3  ;;  %s486_s24 = int_to_ptr.hbm [resolvable:$true] %s485_s24 }
  0x43   : > { %s469_s23 = scalar_lea.sflag [#allocation4], %s332_s9  ;;  %s741_s8 = sshra.s32 %s486_s24, 4  ;;  %s742_s8 = int_to_ptr.hbm [resolvable:$true] %s741_s8 }
  0x44   : > { %v359_v15 = vsub.f32 1.0, %v358_v14  ;;  %457 = vmatpush.bf16.msra.mxu0 %v624_v30  ;;  %s743_s10 = scalar_lea.hbm %s742_s8, 16  ;;  %s747_s0 = scalar_lea.hbm %s1057_s5, 128 }
  0x45   : > { %p744_p5 = scmp.ne.s32.totalorder %s742_s8, %s743_s10  ;;  %p748_p8 = scmp.lt.s32.totalorder %s742_s8, %s1057_s5 }
  0x46   : > { %v360_v16 = vmul.f32 %v722_v13, %v359_v15  ;;  %p749_p9 = scmp.lt.s32.totalorder %s747_s0, %s743_s10 }
  0x47   : > { %355 = vadd.xlane.f32.xlu0 %v354_v11  ;;  %p745_p6 = pnand %p744_p5, %p952_p10 }
  0x48   : > { %v361_v17 = vadd.f32 %v722_v13, %v360_v16  ;;  %458 = vmatpush.bf16.msra.mxu0 %v623_v31  ;;  %p750_p11 = por %p749_p9, %p748_p8 }
  0x49   : > { %p746_p7 = pneg %p745_p6 }
  0x4a   : > { %v363_v18 = vsel %vm362_vm1, %v722_v13, %v361_v17 }
  0x4b   : > { %p751_p13 = pnand %p750_p11, %p746_p7 }
  0x4c   : > { %459 = vmatpush.bf16.msra.mxu0 %v622_v33 }
  0xb2   : > { %v353_v19 = vpop.xlane.xlu0 %352 }
  0xb3   : > { %v364_v20 = vmul.f32 %v363_v18, %v353_v19 }
  0xb5   : > { %v366_v21 = vsub.f32 %v346_v8, %v364_v20 }
  0xb7   : > { %v368_v22 = vmul.f32 %v366_v21, %v366_v21 }
  0xb9   : > { %v370_v23 = vsel %vm350_vm0, %v368_v22, 0.0 }
  0xba   : > { %371 = vadd.xlane.f32.xlu1 %v370_v23  ;;  %v356_v24 = vpop.xlane.xlu0 %355 }
  0xbb   : > { %v365_v25 = vmul.f32 %v363_v18, %v356_v24 }
  0xbd   : > { %v367_v26 = vsub.f32 %v347_v10, %v365_v25 }
  0xbf   : > { %v369_v27 = vmul.f32 %v367_v26, %v367_v26 }
  0xc1   : > { %v373_v28 = vsel %vm350_vm0, %v369_v27, 0.0 }
  0xc2   : > { %374 = vadd.xlane.f32.xlu1 %v373_v28 }
 0x12d   : > { %v372_v32 = vpop.xlane.xlu1 %371 }
 0x12e   : > { %v376_v34 = vmul.f32 %v372_v32, %v363_v18 }
 0x130   : > { %v378_v35 = vadd.f32 1e-05, %v376_v34 }
 0x132   : > { %723 = vrsqrt.f32 %v378_v35  ;;  %vm386_vm3 = vweird.f32 %v378_v35 }
 0x135   : > { %v375_v36 = vpop.xlane.xlu1 %374 }
 0x136   : > { %v377_v37 = vmul.f32 %v375_v36, %v363_v18 }
 0x138   : > { %v724_v38 = vpop.eup %723  ;;  %v379_v39 = vadd.f32 1e-05, %v377_v37 }
 0x139   : > { %v381_v40 = vmul.f32 %v724_v38, %v378_v35  ;;  %vm387_vm2 = vweird.f32 %v724_v38 }
 0x13a   : > { %725 = vrsqrt.f32 %v379_v39  ;;  %vm388_vm4 = vmor %vm386_vm3, %vm387_vm2  ;;  %vm396_vm6 = vweird.f32 %v379_v39 }
 0x13b   : > { %v382_v41 = vmul.f32 %v724_v38, %v381_v40 }
 0x13d   : > { %v383_v42 = vmul.f32 0.5, %v382_v41 }
 0x13f   : > { %v384_v43 = vsub.f32 1.5, %v383_v42 }
 0x140   : > { %v726_v44 = vpop.eup %725 }
 0x141   : > { %v385_v45 = vmul.f32 %v724_v38, %v384_v43  ;;  %v391_v46 = vmul.f32 %v726_v44, %v379_v39  ;;  %vm397_vm5 = vweird.f32 %v726_v44 }
 0x142   : > { %vm398_vm7 = vmor %vm396_vm6, %vm397_vm5 }
 0x143   : > { %v392_v47 = vmul.f32 %v726_v44, %v391_v46  ;;  %v389_v48 = vsel %vm388_vm4, %v724_v38, %v385_v45 }
 0x144   : > { %v400_v51 = vmul.f32 %v389_v48, %v366_v21 }
 0x145   : > { %v393_v49 = vmul.f32 0.5, %v392_v47 }
 0x146   : > { %v405_v56 = vmul.f32 %v718_v52, %v400_v51 }
 0x147   : > { %v394_v50 = vsub.f32 1.5, %v393_v49 }
 0x148   : > { %v410_v59 = vadd.f32 %v719_v57, %v405_v56 }
 0x149   : > { %v395_v53 = vmul.f32 %v726_v44, %v394_v50 }
 0x14b   : > { %v399_v54 = vsel %vm398_vm7, %v726_v44, %v395_v53 }
 0x14c   : > { %v401_v55 = vmul.f32 %v399_v54, %v367_v26 }
 0x14e   : > { %v406_v58 = vmul.f32 %v718_v52, %v401_v55 }
 0x150   : > { %v411_v60 = vadd.f32 %v719_v57, %v406_v58 }
 0x152   : > { %v412_v61 = vpack.c.bf16 %v411_v60, %v410_v59 }
 0x154   : > { %615 = vmatmul.msk.bf16.vlgmr.msra.gmra.mxu0 %vm350_vm0, %v412_v61 }
 0x1d1   : > { %v461_v63 = vpop.f32.mrf.mxu0 }
 0x1d2   : > { %v462_v0 = vadd.f32 %v720_v62, %v461_v63 }
 0x1d4   : > { %466 = vst [vmem:[%s334_s2] sm:$0xff] %v462_v0 }
 0x1d9   : > { %v463_v1 = vpop.f32.mrf.mxu0 }
 0x1da   : > { %v464_v2 = vadd.f32 %v720_v62, %v463_v1 }
 0x1dc   : > { %467 = vst [vmem:[%s334_s2 + $0x8] sm:$0xff] %v464_v2 }
 0x1dd   : > { %754 = shalt.err (!%p751_p13)
}
 0x1de   : > { %s840_s1 = smov 128   ;;  %s841_s2 = smov 256  }
 0x1df   : > { %s842_s9 = smov 8  }
 0x1e0   : > { %627 = dma.vmem_to_hbm [thread:$0]  (%p952_p10), %s484_s3, 256, %s486_s24, %s469_s23, %s840_s1, %s841_s2, %s842_s9  }
 0x1e1 PF: > { %p633_p0 = scmp.ge.s32.totalorder %s837_s27, 2  ;;  %s500_s28 = sand.u32 1, %s801_s18  }
 0x1e2   : > { %s501_s7 = scalar_lea.sflag [#allocation4], %s500_s28 }
 0x1e3   : > { %p630_p1 = pnand %p633_p0, %p959_p12 }
 0x1e5   : > { %p631_p2 = pneg %p630_p1 }
 0x1e7   : > { %796 = dma.done.wait (%p631_p2), %s501_s7, 256  }
 0x1e8   : > { %798 = vsyncadd (%p631_p2), %s501_s7, 4294967040  ;;  %s18_s27 = sadd.s32 1, %s837_s27   ;;  %s1069_s18 = smov %s805_s19 }
 0x1e9   : > { %p15_p3 = scmp.ge.s32.totalorder %s18_s27, 10   ;;  %s1070_s19 = smov %s809_s20 }
 0x1ea   : > { %s1071_s20 = smov %s957_s15  ;;  %s1072_s21 = smov %s817_s22 }
 0x1eb   : > { %s1073_s22 = smov %s946_s11  ;;  %s1074_s23 = smov %s829_s25 }
 0x1ec   : > { %s1075_s24 = smov %s833_s26  ;;  %s1076_s25 = smov %s1079_s30 }
 0x1ed   : > { %s1077_s26 = smov %s1083_s6  ;;  %17 = sbr.rel (!%p15_p3) target bundleno = 11 (0xb), region = 127 }
 0x1f2   :  { %507 = vsyncpa [#allocation4], 1 }
 0x1f3   :  { %509 = vsyncpa [#allocation4 + $0x1], 1 }

// kernel: gpt_forward.9
= control target key start
LH: loop header
LB: loop body
LE: loop exit
PB: predicated region body
PF: predicated region fallthrough
CT: control target
= control target key end

     0   :  { %s1671_s0 = inlined_call_operand.vmem [shape: f32[64,64], index: 0, kind: input, shape index: {}]   ;;  %s1672_s1 = inlined_call_operand.vmem [shape: bf16[64,64], index: 1, kind: input, shape index: {}]   ;;  %s1673_s2 = inlined_call_operand.vmem [shape: bf16[64,64], index: 2, kind: input, shape index: {}]   ;;  %s1674_s3 = inlined_call_operand.vmem [shape: f32[1,64], index: 3, kind: input, shape index: {}]   ;;  %s1675_s4 = inlined_call_operand.vmem [shape: f32[1,64], index: 4, kind: input, shape index: {}]   ;;  %s1676_s5 = inlined_call_operand.vmem [shape: f32[1,64], index: 5, kind: input, shape index: {}]   ;;  %s1677_s6 = inlined_call_operand.vmem [shape: bf16[64,256], index: 6, kind: input, shape index: {}]   ;;  %s1678_s7 = inlined_call_operand.vmem [shape: f32[1,256], index: 7, kind: input, shape index: {}]   ;;  %s1679_s8 = inlined_call_operand.vmem [shape: bf16[256,64], index: 8, kind: input, shape index: {}]   ;;  %s1680_s9 = inlined_call_operand.vmem [shape: f32[1,64], index: 9, kind: input, shape index: {}]   ;;  %s1681_s10 = inlined_call_operand.vmem [shape: f32[1,64], index: 10, kind: input, shape index: {}]   ;;  %s1682_s11 = inlined_call_operand.vmem [shape: f32[1,64], index: 11, kind: input, shape index: {}]   ;;  %s1683_s12 = inlined_call_operand.vmem [shape: f32[64,64], index: 12, kind: output, shape index: {}]  }
   0x1   :  { %1689 = sst [smem:[#allocation12_spill]] %s1671_s0 }
   0x2   :  { %1690 = sst [smem:[#allocation13_spill]] %s1677_s6 }
   0x3   :  { %s1471_s21 = smov 0   ;;  %s1473_s22 = smov 0  }
   0x4   :  { %s1475_s23 = smov 0   ;;  %s1477_s24 = smov 0  }
   0x5   :  { %s1479_s25 = smov 0   ;;  %s1481_s26 = smov 0  }
   0x6   :  { %s1483_s27 = smov 0  }
   0x7 LB: > { %1691 = sst [smem:[#allocation5_spill]] %s1380_s22  ;;  %s31_s28 = sadd.s32 1, %s1392_s25  ;;  %s1400_s27 = sphi %s1483_s27, %s22_s27   ;;  %s1396_s26 = sphi %s1481_s26, %s1706_s26   ;;  %s1392_s25 = sphi %s1479_s25, %s1705_s25   ;;  %s1388_s24 = sphi %s1477_s24, %s1704_s24   ;;  %s1384_s23 = sphi %s1475_s23, %s1703_s23   ;;  %s1380_s22 = sphi %s1473_s22, %s1702_s22   ;;  %s1376_s21 = sphi %s1471_s21, %s1701_s21  }
   0x8   : > { %1692 = sst [smem:[#allocation6_spill]] %s1392_s25  ;;  %s34_s29 = sadd.s32 1, %s1396_s26 }
   0x9   : > { %1693 = sst [smem:[#allocation7_spill]] %s1396_s26  ;;  %p32_p0 = scmp.ge.s32.totalorder %s31_s28, 2 }
   0xa   : > { %1694 = sst [smem:[#allocation8_spill]] %s1400_s27  ;;  %s177_s30 = sadd.s32 1, %s1380_s22 }
   0xb   : > { %p184_p1 = scmp.ne.s32.totalorder %s1380_s22, %s1376_s21  ;;  %p185_p2 = scmp.eq.s32.totalorder %s1400_s27, 0 }
   0xc   : > { %s1708_s28 = smov (%p32_p0, %s31_s28), 0  ;;  %s1710_s29 = smov (!%p32_p0, %s34_s29), %s1396_s26 }
   0xd   : > { %1695 = sst [smem:[#allocation9_spill]] %s1708_s28  ;;  %s174_s13 = ssub.s32 %s1392_s25, %s1708_s28 }
   0xe   : > { %p186_p3 = por %p185_p2, %p184_p1  ;;  %p36_p4 = scmp.ge.s32.totalorder %s1710_s29, 4 }
   0xf   : > { %p175_p5 = scmp.eq.s32.totalorder %s174_s13, 0  ;;  %p1155_p6 = scmp.ge.s32.totalorder %s1400_s27, 8 }
  0x10   : > { %s1712_s29 = smov (%p36_p4, %s1710_s29), 0 }
  0x11   : > { %1696 = sst [smem:[#allocation10_spill]] %s1712_s29  ;;  %372 = sbr.rel (%p1155_p6) target bundleno = 40 (0x28), region = 44 }
  0x12   : > { %s1520_s14 = scalar_select %p175_p5, %s1380_s22, %s177_s30  }
  0x14   : > { %1697 = sst [smem:[#allocation11_spill]] %s1520_s14 }
  0x16   : > { %393 = sbr.rel (!%p186_p3) target bundleno = 40 (0x28), region = 56  ;;  %s395_s15 = sand.u32 (%p186_p3), 1, %s1380_s22  }
  0x17   : > { %s1157_s16 = sshll.u32 (%p186_p3), %s1392_s25, 2  ;;  %s1156_s17 = sshll.u32 (%p186_p3), %s395_s15, 5 }
  0x18   : > { %s1698_s6 = sld [smem:[#allocation13_spill]] (%p186_p3)  ;;  %s397_s13 = scalar_lea.vmem (%p186_p3), [#allocation4], %s1156_s17 }
  0x1e   : > { %s399_s20 = scalar_lea.vmem %s1698_s6, %s1157_s16 }
  0x1f   : > { %v416_v0 = vld [vmem:[%s399_s20] sm:$0xf]  ;;  %v418_v1 = vld [vmem:[%s399_s20 + $0x8] sm:$0xf]  ;;  %v420_v2 = vld [vmem:[%s399_s20 + $0x10] sm:$0xf] }
  0x20   : > { %417 = vst [vmem:[%s397_s13] sm:$0xf] %v416_v0  ;;  %v422_v3 = vld [vmem:[%s399_s20 + $0x18] sm:$0xf]  ;;  %v424_v4 = vld [vmem:[%s399_s20 + $0x20] sm:$0xf] }
  0x21   : > { %419 = vst [vmem:[%s397_s13 + $0x4] sm:$0xf] %v418_v1  ;;  %v426_v5 = vld [vmem:[%s399_s20 + $0x28] sm:$0xf]  ;;  %v428_v6 = vld [vmem:[%s399_s20 + $0x30] sm:$0xf] }
  0x22   : > { %421 = vst [vmem:[%s397_s13 + $0x8] sm:$0xf] %v420_v2  ;;  %v430_v7 = vld [vmem:[%s399_s20 + $0x38] sm:$0xf] }
  0x23   : > { %423 = vst [vmem:[%s397_s13 + $0xc] sm:$0xf] %v422_v3 }
  0x24   : > { %425 = vst [vmem:[%s397_s13 + $0x10] sm:$0xf] %v424_v4 }
  0x25   : > { %427 = vst [vmem:[%s397_s13 + $0x14] sm:$0xf] %v426_v5 }
  0x26   : > { %429 = vst [vmem:[%s397_s13 + $0x18] sm:$0xf] %v428_v6 }
  0x27   : > { %431 = vst [vmem:[%s397_s13 + $0x1c] sm:$0xf] %v430_v7 }
  0x28 PF: > { %p1158_p7 = scmp.ge.s32.totalorder %s1400_s27, 1  ;;  %p485_p8 = scmp.lt.s32.totalorder %s1400_s27, 9 }
  0x2a   : > { %p486_p9 = pnand %p1158_p7, %p485_p8 }
  0x2b   : > { %s492_s30 = sand.u32 (!%p486_p9), 1, %s1376_s21   ;;  %s1160_s15 = sshll.u32 (!%p486_p9), %s1388_s24, 1 }
  0x2c   : > { %489 = sbr.rel (%p486_p9) target bundleno = 1106 (0x452), region = 105  ;;  %s1159_s16 = sshll.u32 (!%p486_p9), %s492_s30, 5 }
  0x2d   : > { %p552_p10 = scmp.lt.s32.totalorder (!%p486_p9), %s1160_s15, 7  ;;  %p563_p11 = scmp.lt.s32.totalorder (!%p486_p9), %s1384_s23, 1 }
  0x2e   : > { %s1699_s0 = sld [smem:[#allocation12_spill]] (!%p486_p9)  ;;  %s1164_s25 = sshll.u32 (!%p486_p9), %s1384_s23, 4 }
  0x2f   : > { %p567_p12 = scmp.lt.s32.totalorder (!%p486_p9), %s1164_s25, 31  ;;  %s1559_s28 = scalar_lea.vmem (!%p486_p9), [#allocation4], %s1159_s16 }
  0x30   : > { %p1168_p13 = scmp.ne.s32.totalorder (!%p486_p9), %s1384_s23, 0 }
  0x31   : > { %s1714_s15 = smov (!%p552_p10, %s1160_s15), 7  ;;  %s1716_s25 = smov (!%p567_p12, %s1164_s25), 31 }
  0x32   : > { %s1534_s17 = scalar_select %p563_p11, %s1384_s23, 1 }
  0x33   : > { %s1161_s18 = sshll.u32 %s1714_s15, 3  ;;  %s1163_s19 = sshll.u32 %s1714_s15, 2 }
  0x34   : > { %s1539_s6 = scalar_lea.vmem %s1699_s0, %s1161_s18  ;;  %s561_s26 = scalar_lea.vmem %s1672_s1, %s1163_s19 }
  0x35   : > { %s565_s30 = scalar_lea.vmem %s1678_s7, %s1534_s17  ;;  %s1552_s27 = scalar_lea.vmem %s1683_s12, %s1161_s18 }
  0x36   : > { %s1165_s15 = sshll.u32 %s1716_s25, 2  ;;  %582 = sbr.rel (%p1168_p13) target bundleno = 482 (0x1e2), region = 113 }
  0x37   : > { %s1557_s0 = scalar_lea.vmem %s1679_s8, %s1165_s15 }
  0x3b   : > { %v1248_v8 = vld [vmem:[%s1673_s2 + $0x18] sm:$0xff]  ;;  %vm626_vm0 = vcmask 523264   ;;  %v1402_v9 = vmov 0.0   ;;  %v1247_v10 = vld [vmem:[%s1673_s2 + $0x10] sm:$0xff]  ;;  %v1246_v11 = vld [vmem:[%s1673_s2 + $0x8] sm:$0xff]  ;;  %v1403_v25 = vmov 64.0  }
  0x3c   : > { %713 = vst.msk [vmem:[#allocation3] sm:$0xff] %vm626_vm0, %v1402_v9  ;;  %634 = vmatpush.bf16.msra.mxu0 %v1248_v8  ;;  %v1245_v12 = vld [vmem:[%s1673_s2] sm:$0xff]  ;;  %v645_v21 = vld [vmem:[%s1539_s6 + $0x8] sm:$0xff]  ;;  %1324 = vrcp.f32 %v1403_v25 }
  0x3d   : > { %714 = vst.msk [vmem:[#allocation3 + $0x8] sm:$0xff] %vm626_vm0, %v1402_v9  ;;  %v1244_v13 = vld [vmem:[%s561_s26] sm:$0xff] }
  0x3e   : > { %v1321_v14 = vld [vmem:[%s1674_s3] ss:$0 sm:$0xff] }
  0x3f   : > { %v644_v16 = vld [vmem:[%s1539_s6] sm:$0xff] }
  0x40   : > { %635 = vmatpush.bf16.msra.mxu0 %v1247_v10  ;;  %v1322_v56 = vld [vmem:[%s1675_s4] ss:$0 sm:$0xff] }
  0x41   : > { %v1323_v59 = vld [vmem:[%s1676_s5] ss:$0 sm:$0xff] }
  0x42   : > { %v1325_v26 = vpop.eup %1324 }
  0x43   : > { %v657_v27 = vmul.f32 64.0, %v1325_v26  ;;  %vm661_vm1 = vweird.f32 %v1325_v26 }
  0x44   : > { %636 = vmatpush.bf16.msra.mxu0 %v1246_v11 }
  0x45   : > { %v658_v28 = vsub.f32 1.0, %v657_v27 }
  0x47   : > { %v659_v29 = vmul.f32 %v1325_v26, %v658_v28 }
  0x48   : > { %637 = vmatpush.bf16.msra.mxu0 %v1245_v12 }
  0x49   : > { %v660_v30 = vadd.f32 %v1325_v26, %v659_v29 }
  0x4b   : > { %1189 = vmatmul.msk.bf16.vlgmr.msra.gmra.mxu0 %vm626_vm0, %v1244_v13  ;;  %v662_v31 = vsel %vm661_vm1, %v1325_v26, %v660_v30 }
  0xc8   : > { %v639_v15 = vpop.f32.mrf.mxu0 }
  0xc9   : > { %v640_v17 = vadd.f32 %v1321_v14, %v639_v15 }
  0xcb   : > { %v646_v18 = vadd.f32 %v644_v16, %v640_v17 }
  0xcd   : > { %v650_v19 = vsel %vm626_vm0, %v646_v18, 0.0 }
  0xce   : > { %651 = vadd.xlane.f32.xlu0 %v650_v19 }
  0xd0   : > { %v641_v20 = vpop.f32.mrf.mxu0 }
  0xd1   : > { %v642_v22 = vadd.f32 %v1321_v14, %v641_v20 }
  0xd3   : > { %v647_v23 = vadd.f32 %v645_v21, %v642_v22 }
  0xd5   : > { %v653_v24 = vsel %vm626_vm0, %v647_v23, 0.0 }
  0xd6   : > { %654 = vadd.xlane.f32.xlu0 %v653_v24 }
 0x141   : > { %v652_v32 = vpop.xlane.xlu0 %651 }
 0x142   : > { %v663_v33 = vmul.f32 %v662_v31, %v652_v32 }
 0x144   : > { %v665_v34 = vsub.f32 %v646_v18, %v663_v33 }
 0x146   : > { %v667_v35 = vmul.f32 %v665_v34, %v665_v34 }
 0x148   : > { %v669_v36 = vsel %vm626_vm0, %v667_v35, 0.0 }
 0x149   : > { %670 = vadd.xlane.f32.xlu1 %v669_v36  ;;  %v655_v37 = vpop.xlane.xlu0 %654 }
 0x14a   : > { %v664_v38 = vmul.f32 %v662_v31, %v655_v37 }
 0x14c   : > { %v666_v39 = vsub.f32 %v647_v23, %v664_v38 }
 0x14e   : > { %v668_v40 = vmul.f32 %v666_v39, %v666_v39 }
 0x150   : > { %v672_v41 = vsel %vm626_vm0, %v668_v40, 0.0 }
 0x151   : > { %673 = vadd.xlane.f32.xlu1 %v672_v41 }
 0x1bc   : > { %v671_v42 = vpop.xlane.xlu1 %670 }
 0x1bd   : > { %v675_v43 = vmul.f32 %v671_v42, %v662_v31 }
 0x1bf   : > { %v677_v44 = vadd.f32 1e-05, %v675_v43 }
 0x1c1   : > { %1326 = vrsqrt.f32 %v677_v44  ;;  %vm685_vm3 = vweird.f32 %v677_v44 }
 0x1c4   : > { %v674_v45 = vpop.xlane.xlu1 %673 }
 0x1c5   : > { %v676_v46 = vmul.f32 %v674_v45, %v662_v31 }
 0x1c7   : > { %v1327_v47 = vpop.eup %1326  ;;  %v678_v48 = vadd.f32 1e-05, %v676_v46 }
 0x1c8   : > { %v680_v49 = vmul.f32 %v1327_v47, %v677_v44  ;;  %vm686_vm2 = vweird.f32 %v1327_v47 }
 0x1c9   : > { %1328 = vrsqrt.f32 %v678_v48  ;;  %vm687_vm4 = vmor %vm685_vm3, %vm686_vm2  ;;  %vm695_vm6 = vweird.f32 %v678_v48 }
 0x1ca   : > { %v681_v50 = vmul.f32 %v1327_v47, %v680_v49 }
 0x1cc   : > { %v682_v51 = vmul.f32 0.5, %v681_v50 }
 0x1ce   : > { %v683_v52 = vsub.f32 1.5, %v682_v51 }
 0x1cf   : > { %v1329_v53 = vpop.eup %1328 }
 0x1d0   : > { %v684_v54 = vmul.f32 %v1327_v47, %v683_v52  ;;  %v690_v55 = vmul.f32 %v1329_v53, %v678_v48  ;;  %vm696_vm5 = vweird.f32 %v1329_v53 }
 0x1d1   : > { %vm697_vm7 = vmor %vm695_vm6, %vm696_vm5 }
 0x1d2   : > { %v688_v57 = vsel %vm687_vm4, %v1327_v47, %v684_v54  ;;  %v691_v58 = vmul.f32 %v1329_v53, %v690_v55 }
 0x1d3   : > { %v699_v60 = vmul.f32 %v688_v57, %v665_v34 }
 0x1d4   : > { %v692_v61 = vmul.f32 0.5, %v691_v58 }
 0x1d5   : > { %v704_v62 = vmul.f32 %v1322_v56, %v699_v60 }
 0x1d6   : > { %v693_v63 = vsub.f32 1.5, %v692_v61 }
 0x1d7   : > { %v709_v0 = vadd.f32 %v1323_v59, %v704_v62 }
 0x1d8   : > { %v694_v1 = vmul.f32 %v1329_v53, %v693_v63 }
 0x1d9   : > { %711 = vst.msk [vmem:[#allocation2] sm:$0xff] %vm626_vm0, %v709_v0 }
 0x1da   : > { %v698_v2 = vsel %vm697_vm7, %v1329_v53, %v694_v1 }
 0x1db   : > { %v700_v3 = vmul.f32 %v698_v2, %v666_v39 }
 0x1dd   : > { %v705_v4 = vmul.f32 %v1322_v56, %v700_v3 }
 0x1df   : > { %v710_v5 = vadd.f32 %v1323_v59, %v705_v4 }
 0x1e1   : > { %712 = vst.msk [vmem:[#allocation2 + $0x8] sm:$0xff] %vm626_vm0, %v710_v5 }
 0x1e2 PF: > { %v1252_v6 = vld [vmem:[%s1559_s28 + $0x18] sm:$0xff]  ;;  %v1251_v7 = vld [vmem:[%s1559_s28 + $0x10] sm:$0xff]  ;;  %v1250_v8 = vld [vmem:[%s1559_s28 + $0x8] sm:$0xff]  ;;  %vm754_vm8 = vcmask 523264   ;;  %v1404_v13 = vmov 1.4142135  }
 0x1e3   : > { %762 = vmatpush.bf16.msra.mxu0 %v1252_v6  ;;  %v1249_v9 = vld [vmem:[%s1559_s28] sm:$0xff]  ;;  %1331 = vrcp.f32 %v1404_v13  ;;  %v1260_v20 = vld [vmem:[%s1557_s0 + $0x38] sm:$0xff]  ;;  %v1259_v25 = vld [vmem:[%s1557_s0 + $0x30] sm:$0xff]  ;;  %p1241_p0 = scmp.ne.s32.totalorder %s1384_s23, 1 }
 0x1e4   : > { %v715_v10 = vld [vmem:[#allocation2] sm:$0xff]  ;;  %934 = vmatpush.bf16.msra.mxu1 %v1260_v20  ;;  %v1258_v27 = vld [vmem:[%s1557_s0 + $0x28] sm:$0xff]  ;;  %v1256_v38 = vld [vmem:[%s1557_s0 + $0x18] sm:$0xff] }
 0x1e5   : > { %v1330_v19 = vld [vmem:[%s565_s30] ss:$0 sm:$0xff]  ;;  %v1255_v44 = vld [vmem:[%s1557_s0 + $0x10] sm:$0xff]  ;;  %v1254_v52 = vld [vmem:[%s1557_s0 + $0x8] sm:$0xff] }
 0x1e6   : > { %v1257_v32 = vld [vmem:[%s1557_s0 + $0x20] sm:$0xff] }
 0x1e7   : > { %763 = vmatpush.bf16.msra.mxu0 %v1251_v7  ;;  %v1253_v59 = vld [vmem:[%s1557_s0] sm:$0xff] }
 0x1e8   : > { %v716_v11 = vld [vmem:[#allocation2 + $0x8] sm:$0xff]  ;;  %935 = vmatpush.bf16.msra.mxu1 %v1259_v25 }
 0x1e9   : > { %v717_v12 = vpack.c.bf16 %v716_v11, %v715_v10  ;;  %v1332_v14 = vpop.eup %1331 }
 0x1ea   : > { %v775_v15 = vmul.f32 1.4142135, %v1332_v14  ;;  %vm779_vm9 = vweird.f32 %v1332_v14 }
 0x1eb   : > { %764 = vmatpush.bf16.msra.mxu0 %v1250_v8 }
 0x1ec   : > { %v776_v16 = vsub.f32 1.0, %v775_v15  ;;  %936 = vmatpush.bf16.msra.mxu1 %v1258_v27 }
 0x1ee   : > { %v777_v17 = vmul.f32 %v1332_v14, %v776_v16 }
 0x1ef   : > { %765 = vmatpush.bf16.msra.mxu0 %v1249_v9 }
 0x1f0   : > { %v778_v18 = vadd.f32 %v1332_v14, %v777_v17  ;;  %937 = vmatpush.bf16.msra.mxu1 %v1257_v32 }
 0x1f2   : > { %1206 = vmatmul.msk.bf16.vlgmr.msra.gmra.mxu0 %vm754_vm8, %v717_v12  ;;  %v780_v22 = vsel %vm779_vm9, %v1332_v14, %v778_v18 }
 0x1f4   : > { %938 = vmatpush.bf16.msra.mxu1 %v1256_v38 }
 0x1f8   : > { %939 = vmatpush.bf16.msra.mxu1 %v1255_v44 }
 0x1fc   : > { %940 = vmatpush.bf16.msra.mxu1 %v1254_v52 }
 0x200   : > { %941 = vmatpush.bf16.msra.mxu1 %v1253_v59 }
 0x26f   : > { %v767_v21 = vpop.f32.mrf.mxu0 }
 0x270   : > { %v1605_v23 = vadd.f32 %v1330_v19, %v767_v21 }
 0x272   : > { %v1608_v24 = vmul.f32 %v780_v22, %v1605_v23 }
 0x274   : > { %v783_v26 = vmul.f32 %v1608_v24, %v1608_v24 }
 0x276   : > { %v784_v28 = vmin.f32 %v783_v26, 16.0 }
 0x277   : > { %v769_v29 = vpop.f32.mrf.mxu0 }
 0x278   : > { %v785_v30 = vmul.f32 2.1237322e-06, %v784_v28  ;;  %v1614_v31 = vadd.f32 %v1330_v19, %v769_v29  ;;  %v796_v33 = vmul.f32 3.8918573e-05, %v784_v28 }
 0x27a   : > { %v786_v34 = vadd.f32 0.00028619796, %v785_v30  ;;  %v1618_v35 = vmul.f32 %v780_v22, %v1614_v31  ;;  %v797_v36 = vadd.f32 0.001143296, %v796_v33 }
 0x27c   : > { %v823_v37 = vmul.f32 %v1618_v35, %v1618_v35  ;;  %v798_v39 = vmul.f32 %v797_v36, %v784_v28  ;;  %v787_v40 = vmul.f32 %v786_v34, %v784_v28 }
 0x27e   : > { %v824_v41 = vmin.f32 %v823_v37, 16.0  ;;  %v799_v42 = vadd.f32 0.014752088, %v798_v39  ;;  %v788_v47 = vadd.f32 0.0036580483, %v787_v40 }
 0x280   : > { %v825_v43 = vmul.f32 2.1237322e-06, %v824_v41  ;;  %v800_v45 = vmul.f32 %v799_v42, %v784_v28  ;;  %v836_v46 = vmul.f32 3.8918573e-05, %v824_v41  ;;  %v789_v55 = vmul.f32 %v788_v47, %v784_v28 }
 0x282   : > { %v826_v48 = vadd.f32 0.00028619796, %v825_v43  ;;  %v801_v49 = vadd.f32 0.112945676, %v800_v45  ;;  %v837_v50 = vadd.f32 0.001143296, %v836_v46 }
 0x283   : > { %v790_v62 = vadd.f32 0.05243302, %v789_v55  ;;  %v772_v45 = vmul.f32 0.5, %v1605_v23  ;;  %v773_v46 = vmul.f32 0.5, %v1614_v31 }
 0x284   : > { %v827_v51 = vmul.f32 %v826_v48, %v824_v41  ;;  %v802_v53 = vmul.f32 %v801_v49, %v784_v28  ;;  %v838_v54 = vmul.f32 %v837_v50, %v824_v41 }
 0x285   : > { %v791_v3 = vmul.f32 %v790_v62, %v784_v28 }
 0x286   : > { %v803_v56 = vadd.f32 0.4994258, %v802_v53  ;;  %v828_v57 = vadd.f32 0.0036580483, %v827_v51  ;;  %v839_v58 = vadd.f32 0.014752088, %v838_v54 }
 0x287   : > { %v792_v8 = vadd.f32 0.18741608, %v791_v3  ;;  %v867_v51 = vld [vmem:[#allocation3] sm:$0xff] }
 0x288   : > { %v804_v60 = vmul.f32 %v803_v56, %v784_v28  ;;  %v840_v61 = vmul.f32 %v839_v58, %v824_v41  ;;  %v829_v0 = vmul.f32 %v828_v57, %v824_v41 }
 0x289   : > { %v793_v13 = vmul.f32 %v792_v8, %v784_v28 }
 0x28a   : > { %v805_v63 = vadd.f32 1.0, %v804_v60  ;;  %v841_v1 = vadd.f32 0.112945676, %v840_v61  ;;  %v830_v4 = vadd.f32 0.05243302, %v829_v0 }
 0x28b   : > { %v794_v19 = vadd.f32 1.1283791, %v793_v13 }
 0x28c   : > { %1333 = vrcp.f32 %v805_v63  ;;  %v842_v2 = vmul.f32 %v841_v1, %v824_v41  ;;  %v831_v9 = vmul.f32 %v830_v4, %v824_v41  ;;  %v817_v16 = vand.u32 2147483648, %v805_v63 }
 0x28d   : > { %v815_v17 = vand.u32 2147483647, %v805_v63  ;;  %vm811_vm11 = vweird.f32 %v805_v63  ;;  %v795_v29 = vmul.f32 %v794_v19, %v1608_v24 }
 0x28e   : > { %v843_v5 = vadd.f32 0.4994258, %v842_v2  ;;  %v832_v14 = vadd.f32 0.18741608, %v831_v9  ;;  %v818_v25 = vor.u32 1.1754944e-38, %v817_v16 }
 0x28f   : > { %vm816_vm13 = vcmp.eq.f32.partialorder %v815_v17, 8.507059e+37 }
 0x290   : > { %v844_v6 = vmul.f32 %v843_v5, %v824_v41  ;;  %v833_v21 = vmul.f32 %v832_v14, %v824_v41 }
 0x292   : > { %v1334_v7 = vpop.eup %1333  ;;  %v845_v11 = vadd.f32 1.0, %v844_v6  ;;  %v834_v28 = vadd.f32 1.1283791, %v833_v21 }
 0x293   : > { %v807_v10 = vmul.f32 %v1334_v7, %v805_v63  ;;  %vm812_vm10 = vweird.f32 %v1334_v7 }
 0x294   : > { %1335 = vrcp.f32 %v845_v11  ;;  %vm813_vm12 = vmor %vm811_vm11, %vm812_vm10  ;;  %v857_v32 = vand.u32 2147483648, %v845_v11  ;;  %v855_v36 = vand.u32 2147483647, %v845_v11  ;;  %vm851_vm15 = vweird.f32 %v845_v11 }
 0x295   : > { %v808_v12 = vsub.f32 1.0, %v807_v10  ;;  %v835_v39 = vmul.f32 %v834_v28, %v1618_v35  ;;  %v868_v35 = vld [vmem:[#allocation3 + $0x8] sm:$0xff] }
 0x296   : > { %v858_v38 = vor.u32 1.1754944e-38, %v857_v32  ;;  %vm856_vm1 = vcmp.eq.f32.partialorder %v855_v36, 8.507059e+37 }
 0x297   : > { %v809_v15 = vmul.f32 %v1334_v7, %v808_v12 }
 0x299   : > { %v810_v18 = vadd.f32 %v1334_v7, %v809_v15 }
 0x29a   : > { %v1336_v20 = vpop.eup %1335 }
 0x29b   : > { %v814_v22 = vsel %vm813_vm12, %v1334_v7, %v810_v18  ;;  %v847_v26 = vmul.f32 %v1336_v20, %v845_v11  ;;  %vm852_vm14 = vweird.f32 %v1336_v20 }
 0x29c   : > { %v819_v27 = vsel %vm816_vm13, %v818_v25, %v814_v22  ;;  %vm853_vm0 = vmor %vm851_vm15, %vm852_vm14 }
 0x29d   : > { %v848_v30 = vsub.f32 1.0, %v847_v26  ;;  %v820_v33 = vmul.f32 %v819_v27, %v795_v29 }
 0x29f   : > { %v849_v34 = vmul.f32 %v1336_v20, %v848_v30  ;;  %v1207_v40 = vclamps-f32 %v820_v33, 1.0 }
 0x2a1   : > { %v850_v37 = vadd.f32 %v1336_v20, %v849_v34  ;;  %v863_v24 = vadd.f32 1.0, %v1207_v40 }
 0x2a3   : > { %v854_v41 = vsel %vm853_vm0, %v1336_v20, %v850_v37  ;;  %v865_v48 = vmul.f32 %v863_v24, %v772_v45 }
 0x2a4   : > { %v859_v42 = vsel %vm856_vm1, %v858_v38, %v854_v41 }
 0x2a5   : > { %v860_v43 = vmul.f32 %v859_v42, %v835_v39 }
 0x2a7   : > { %v1208_v44 = vclamps-f32 %v860_v43, 1.0 }
 0x2a9   : > { %v864_v47 = vadd.f32 1.0, %v1208_v44 }
 0x2ab   : > { %v866_v49 = vmul.f32 %v864_v47, %v773_v46 }
 0x2ad   : > { %v869_v50 = vpack.c.bf16 %v866_v49, %v865_v48 }
 0x2af   : > { %942 = vmatmul.bf16.vlgmr.msra.gmra.mxu1 %v869_v50 }
 0x32c   : > { %v943_v52 = vpop.f32.mrf.mxu1 }
 0x32d   : > { %v948_v53 = vadd.f32 %v943_v52, %v867_v51 }
 0x32f   : > { %950 = vst.msk [vmem:[#allocation3] sm:$0xff] %vm754_vm8, %v948_v53 }
 0x333   : > { %955 = sbr.rel (%p1241_p0) target bundleno = 1106 (0x452), region = 117 }
 0x334   : > { %v945_v54 = vpop.f32.mrf.mxu1 }
 0x335   : > { %v949_v55 = vadd.f32 %v945_v54, %v868_v35 }
 0x337   : > { %951 = vst.msk [vmem:[#allocation3 + $0x8] sm:$0xff] %vm754_vm8, %v949_v55 }
 0x338   : > { %v956_v23 = vld [vmem:[#allocation2] sm:$0xff]  ;;  %v958_v31 = vld [vmem:[#allocation3] sm:$0xff]  ;;  %v957_v58 = vld [vmem:[#allocation2 + $0x8] sm:$0xff]  ;;  %v1405_v1 = vmov 64.0  }
 0x339   : > { %v960_v56 = vadd.f32 %v958_v31, %v956_v23  ;;  %v1337_v57 = vld [vmem:[%s1680_s9] ss:$0 sm:$0xff]  ;;  %1340 = vrcp.f32 %v1405_v1 }
 0x33a   : > { %v1338_v36 = vld [vmem:[%s1681_s10] ss:$0 sm:$0xff] }
 0x33b   : > { %v966_v60 = vadd.f32 %v1337_v57, %v960_v56  ;;  %v1339_v39 = vld [vmem:[%s1682_s11] ss:$0 sm:$0xff] }
 0x33d   : > { %v970_v62 = vsel %vm754_vm8, %v966_v60, 0.0 }
 0x33e   : > { %v959_v59 = vld [vmem:[#allocation3 + $0x8] sm:$0xff]  ;;  %971 = vadd.xlane.f32.xlu0 %v970_v62 }
 0x33f   : > { %v961_v61 = vadd.f32 %v959_v59, %v957_v58  ;;  %v1341_v2 = vpop.eup %1340 }
 0x340   : > { %v977_v3 = vmul.f32 64.0, %v1341_v2  ;;  %vm981_vm2 = vweird.f32 %v1341_v2 }
 0x341   : > { %v967_v63 = vadd.f32 %v1337_v57, %v961_v61 }
 0x342   : > { %v978_v4 = vsub.f32 1.0, %v977_v3 }
 0x343   : > { %v973_v0 = vsel %vm754_vm8, %v967_v63, 0.0 }
 0x344   : > { %v979_v5 = vmul.f32 %v1341_v2, %v978_v4 }
 0x346   : > { %974 = vadd.xlane.f32.xlu0 %v973_v0  ;;  %v980_v6 = vadd.f32 %v1341_v2, %v979_v5 }
 0x348   : > { %v982_v7 = vsel %vm981_vm2, %v1341_v2, %v980_v6 }
 0x3b1   : > { %v972_v8 = vpop.xlane.xlu0 %971 }
 0x3b2   : > { %v983_v9 = vmul.f32 %v982_v7, %v972_v8 }
 0x3b4   : > { %v985_v10 = vsub.f32 %v966_v60, %v983_v9 }
 0x3b6   : > { %v987_v11 = vmul.f32 %v985_v10, %v985_v10 }
 0x3b8   : > { %v989_v12 = vsel %vm754_vm8, %v987_v11, 0.0 }
 0x3b9   : > { %990 = vadd.xlane.f32.xlu1 %v989_v12  ;;  %v975_v13 = vpop.xlane.xlu0 %974 }
 0x3ba   : > { %v984_v14 = vmul.f32 %v982_v7, %v975_v13 }
 0x3bc   : > { %v986_v15 = vsub.f32 %v967_v63, %v984_v14 }
 0x3be   : > { %v988_v16 = vmul.f32 %v986_v15, %v986_v15 }
 0x3c0   : > { %v992_v17 = vsel %vm754_vm8, %v988_v16, 0.0 }
 0x3c1   : > { %993 = vadd.xlane.f32.xlu1 %v992_v17 }
 0x42c   : > { %v991_v18 = vpop.xlane.xlu1 %990 }
 0x42d   : > { %v995_v19 = vmul.f32 %v991_v18, %v982_v7 }
 0x42f   : > { %v997_v20 = vadd.f32 1e-05, %v995_v19 }
 0x431   : > { %1342 = vrsqrt.f32 %v997_v20  ;;  %vm1005_vm4 = vweird.f32 %v997_v20 }
 0x434   : > { %v994_v21 = vpop.xlane.xlu1 %993 }
 0x435   : > { %v996_v22 = vmul.f32 %v994_v21, %v982_v7 }
 0x437   : > { %v1343_v25 = vpop.eup %1342  ;;  %v998_v26 = vadd.f32 1e-05, %v996_v22 }
 0x438   : > { %v1000_v27 = vmul.f32 %v1343_v25, %v997_v20  ;;  %vm1006_vm3 = vweird.f32 %v1343_v25 }
 0x439   : > { %1344 = vrsqrt.f32 %v998_v26  ;;  %vm1007_vm5 = vmor %vm1005_vm4, %vm1006_vm3  ;;  %vm1015_vm7 = vweird.f32 %v998_v26 }
 0x43a   : > { %v1001_v29 = vmul.f32 %v1343_v25, %v1000_v27 }
 0x43c   : > { %v1002_v30 = vmul.f32 0.5, %v1001_v29 }
 0x43e   : > { %v1003_v28 = vsub.f32 1.5, %v1002_v30 }
 0x43f   : > { %v1345_v32 = vpop.eup %1344 }
 0x440   : > { %v1004_v33 = vmul.f32 %v1343_v25, %v1003_v28  ;;  %v1010_v34 = vmul.f32 %v1345_v32, %v998_v26  ;;  %vm1016_vm6 = vweird.f32 %v1345_v32 }
 0x441   : > { %vm1017_vm9 = vmor %vm1015_vm7, %vm1016_vm6 }
 0x442   : > { %v1008_v37 = vsel %vm1007_vm5, %v1343_v25, %v1004_v33  ;;  %v1011_v38 = vmul.f32 %v1345_v32, %v1010_v34 }
 0x443   : > { %v1019_v40 = vmul.f32 %v1008_v37, %v985_v10 }
 0x444   : > { %v1012_v41 = vmul.f32 0.5, %v1011_v38 }
 0x445   : > { %v1024_v42 = vmul.f32 %v1338_v36, %v1019_v40 }
 0x446   : > { %v1013_v43 = vsub.f32 1.5, %v1012_v41 }
 0x447   : > { %v1029_v44 = vadd.f32 %v1339_v39, %v1024_v42 }
 0x448   : > { %v1014_v24 = vmul.f32 %v1345_v32, %v1013_v43 }
 0x449   : > { %1031 = vst.msk [vmem:[%s1552_s27] sm:$0xff] %vm754_vm8, %v1029_v44 }
 0x44a   : > { %v1018_v45 = vsel %vm1017_vm9, %v1345_v32, %v1014_v24 }
 0x44b   : > { %v1020_v46 = vmul.f32 %v1018_v45, %v986_v15 }
 0x44d   : > { %v1025_v47 = vmul.f32 %v1338_v36, %v1020_v46 }
 0x44f   : > { %v1030_v48 = vadd.f32 %v1339_v39, %v1025_v47 }
 0x451   : > { %1032 = vst.msk [vmem:[%s1552_s27 + $0x8] sm:$0xff] %vm754_vm8, %v1030_v48 }
 0x452 PF: > { %s1700_s25 = sld [smem:[#allocation8_spill]] }
 0x453   : > { %s1701_s21 = sld [smem:[#allocation5_spill]] }
 0x454   : > { %s1702_s22 = sld [smem:[#allocation11_spill]] }
 0x455   : > { %s1703_s23 = sld [smem:[#allocation6_spill]] }
 0x456   : > { %s1704_s24 = sld [smem:[#allocation7_spill]] }
 0x457   : > { %s1706_s26 = sld [smem:[#allocation10_spill]] }
 0x458   : > { %s22_s27 = sadd.s32 1, %s1700_s25   ;;  %s1705_s25 = sld [smem:[#allocation9_spill]] }
 0x459   : > { %p19_p1 = scmp.ge.s32.totalorder %s22_s27, 10  }
 0x45b   :  { %21 = sbr.rel (!%p19_p1) target bundleno = 7 (0x7), region = 164 }

</bundles_post_ra>
